<compile_context>
chip_gen: v7x
topology: tpu7x:2x2x1
jax: 0.10.0
libtpu: 0.0.40
codegen_flags: <defaults>
</compile_context>

<pallas_src>
import functools
import math

import jax
import jax.numpy as jnp
from jax.experimental import pallas as pl
from jax.experimental.pallas import tpu as pltpu


# ---------------------------------------------------------------------------
# Tiling / compiler-param helpers
# ---------------------------------------------------------------------------

_ROW_TILE_CAP = 256          # v7x-safe (64 MiB/TC VMEM); 512 is better on v6e/v5e (128 MiB)
_F_TILE_CAP = 512            # FFN reduction-chunk size for the fused MLP
_VMEM_LIMIT = 64 * 1024 * 1024   # explicit scoped-VMEM limit (v5e default is only ~16 MiB)


def _mosaic_params(*semantics):
    return pltpu.CompilerParams(dimension_semantics=semantics,
                                vmem_limit_bytes=_VMEM_LIMIT)


def _tile(M, cap, quantum):
    """Largest divisor of M that is <= cap and a multiple of `quantum`."""
    if M % quantum != 0:
        return M                       # tiny / ragged shapes: one block
    t = min(M, cap)
    while M % t != 0:
        t -= quantum
    return t


# ---------------------------------------------------------------------------
# Kernels
# ---------------------------------------------------------------------------

def _layernorm_kernel(x_ref, g_ref, b_ref, o_ref):
    x = x_ref[...]                                            # f32
    mu = jnp.mean(x, axis=-1, keepdims=True)
    var = jnp.mean((x - mu) ** 2, axis=-1, keepdims=True)
    o_ref[...] = (x - mu) * jax.lax.rsqrt(var + 1e-12) * g_ref[...] + b_ref[...]


def layernorm(x, g, b):
    M, H = x.shape
    tm = _tile(M, _ROW_TILE_CAP, 8)
    return pl.pallas_call(
        _layernorm_kernel,
        out_shape=jax.ShapeDtypeStruct((M, H), jnp.float32),
        grid=(M // tm,),
        in_specs=[pl.BlockSpec((tm, H), lambda i: (i, 0)),
                  pl.BlockSpec((1, H), lambda i: (0, 0)),
                  pl.BlockSpec((1, H), lambda i: (0, 0))],
        out_specs=pl.BlockSpec((tm, H), lambda i: (i, 0)),
        compiler_params=_mosaic_params("parallel"),
    )(x, g.reshape(1, H), b.reshape(1, H))


def _qkv_kernel(x_ref, w_ref, b_ref, q_ref, k_ref, v_ref, *, q_scale):
    x = x_ref[...].astype(jnp.bfloat16)                       # bf16 MXU operands
    y = jnp.dot(x, w_ref[...], preferred_element_type=jnp.float32) + b_ref[...]
    H = q_ref.shape[-1]
    # 1/sqrt(dH) folded into q here (f32, on top of a mem-bound kernel) instead of
    # scaling the (S,S) score matrices per head inside attention.
    q_ref[...] = (y[:, :H] * q_scale).astype(q_ref.dtype)
    k_ref[...] = y[:, H:2 * H].astype(k_ref.dtype)
    v_ref[...] = y[:, 2 * H:].astype(v_ref.dtype)


def qkv_projection(x, wqkv_bf16, bqkv, n_heads):
    """Fused Q/K/V projection: one launch, xf read once, bf16 q/k/v outputs."""
    M, K = x.shape
    H = wqkv_bf16.shape[1] // 3
    d_head = H // n_heads
    tm = _tile(M, _ROW_TILE_CAP, 8)
    kernel = functools.partial(_qkv_kernel, q_scale=1.0 / math.sqrt(d_head))
    out = jax.ShapeDtypeStruct((M, H), jnp.bfloat16)
    o_spec = pl.BlockSpec((tm, H), lambda i: (i, 0))
    return pl.pallas_call(
        kernel,
        out_shape=(out, out, out),
        grid=(M // tm,),
        in_specs=[pl.BlockSpec((tm, K), lambda i: (i, 0)),
                  pl.BlockSpec((K, 3 * H), lambda i: (0, 0)),   # weight resident across grid
                  pl.BlockSpec((1, 3 * H), lambda i: (0, 0))],
        out_specs=(o_spec, o_spec, o_spec),
        compiler_params=_mosaic_params("parallel"),
    )(x, wqkv_bf16, bqkv.reshape(1, 3 * H))


def _attention_kernel(q_ref, k_ref, v_ref, bias_ref, o_ref, *, n_heads):
    # One batch element per grid step; heads handled in a static loop. Per-head
    # (S, dH) slices are read straight from the bf16 refs, and each head's output
    # is stored into its static column slice of the (S, H) output block — no full
    # f32 q/k/v temporaries and no jnp.concatenate repack.
    bias = bias_ref[0]                                        # (1, S) additive mask, f32
    H = q_ref.shape[-1]
    dH = H // n_heads
    for h in range(n_heads):
        sl = slice(h * dH, (h + 1) * dH)
        qh = q_ref[0, :, sl]                                  # (S, dH) bf16, scale pre-folded
        kh = k_ref[0, :, sl]
        vh = v_ref[0, :, sl]
        s = jax.lax.dot_general(qh, kh, (((1,), (1,)), ((), ())),
                                preferred_element_type=jnp.float32)   # (S, S) f32
        s = s + bias                                          # broadcast over query rows
        m = jnp.max(s, axis=-1, keepdims=True)                # softmax kept in f32
        p = jnp.exp(s - m)
        l = jnp.sum(p, axis=-1, keepdims=True)
        o_h = jnp.dot(p.astype(jnp.bfloat16), vh, preferred_element_type=jnp.float32)
        # normalize the (S, dH) head output, not the (S, S) probabilities
        o_ref[0, :, sl] = (o_h * pl.reciprocal(l, approx=True)).astype(o_ref.dtype)


def attention(q, k, v, neg_bias, n_heads):
    # TODO(synk): add a second 'parallel' grid axis (heads) so both v7x TensorCores are
    #             busy when B is small, and flash-style KV tiling for long S.
    B, S, H = q.shape
    kernel = functools.partial(_attention_kernel, n_heads=n_heads)
    bsh_spec = pl.BlockSpec((1, S, H), lambda b: (b, 0, 0))
    return pl.pallas_call(
        kernel,
        out_shape=jax.ShapeDtypeStruct((B, S, H), jnp.bfloat16),
        grid=(B,),
        in_specs=[bsh_spec, bsh_spec, bsh_spec,
                  pl.BlockSpec((1, 1, S), lambda b: (b, 0, 0))],
        out_specs=bsh_spec,
        compiler_params=_mosaic_params("parallel"),
    )(q, k, v, neg_bias)


def _linear_res_ln_kernel(x_ref, w_ref, b_ref, res_ref, g_ref, beta_ref, o_ref):
    x = x_ref[...].astype(jnp.bfloat16)                       # x may already be bf16
    y = jnp.dot(x, w_ref[...], preferred_element_type=jnp.float32)
    y = y + b_ref[...] + res_ref[...]                         # residual add (f32)
    mu = jnp.mean(y, axis=-1, keepdims=True)
    var = jnp.mean((y - mu) ** 2, axis=-1, keepdims=True)
    o_ref[...] = (y - mu) * jax.lax.rsqrt(var + 1e-12) * g_ref[...] + beta_ref[...]


def linear_residual_layernorm(x, w_bf16, b, residual, g, beta):
    """Fused: layernorm(residual + x @ w + b) — no standalone LN HBM round trips."""
    M, K = x.shape
    N = w_bf16.shape[1]
    tm = _tile(M, _ROW_TILE_CAP, 8)
    return pl.pallas_call(
        _linear_res_ln_kernel,
        out_shape=jax.ShapeDtypeStruct((M, N), jnp.float32),
        grid=(M // tm,),
        in_specs=[pl.BlockSpec((tm, K), lambda i: (i, 0)),
                  pl.BlockSpec((K, N), lambda i: (0, 0)),
                  pl.BlockSpec((1, N), lambda i: (0, 0)),
                  pl.BlockSpec((tm, N), lambda i: (i, 0)),
                  pl.BlockSpec((1, N), lambda i: (0, 0)),
                  pl.BlockSpec((1, N), lambda i: (0, 0))],
        out_specs=pl.BlockSpec((tm, N), lambda i: (i, 0)),
        compiler_params=_mosaic_params("parallel"),
    )(x, w_bf16, b.reshape(1, N), residual, g.reshape(1, N), beta.reshape(1, N))


def _mlp_res_ln_kernel(x_ref, w1_ref, b1_ref, w2_ref, b2_ref, res_ref, g_ref, beta_ref,
                       o_ref, acc_ref):
    f = pl.program_id(1)

    @pl.when(f == 0)
    def _():
        acc_ref[...] = jnp.zeros_like(acc_ref)

    x = x_ref[...].astype(jnp.bfloat16)
    h = jnp.dot(x, w1_ref[...], preferred_element_type=jnp.float32) + b1_ref[...]
    # TODO(synk): HF nomic-bert uses exact erf GELU; tanh approximation used here.
    h = jax.nn.gelu(h, approximate=True)
    acc_ref[...] += jnp.dot(h.astype(jnp.bfloat16), w2_ref[...],
                            preferred_element_type=jnp.float32)

    @pl.when(f == pl.num_programs(1) - 1)
    def _():
        y = acc_ref[...] + b2_ref[...] + res_ref[...]          # residual add (f32)
        mu = jnp.mean(y, axis=-1, keepdims=True)
        var = jnp.mean((y - mu) ** 2, axis=-1, keepdims=True)
        o_ref[...] = (y - mu) * jax.lax.rsqrt(var + 1e-12) * g_ref[...] + beta_ref[...]


def mlp_residual_layernorm(x, w1_bf16, b1, w2_bf16, b2, residual, g, beta):
    """Fully fused MLP block: layernorm(residual + gelu(x @ w1 + b1) @ w2 + b2).

    Grid axis 1 chunks the hidden (F) dimension; the [M, F] GELU activation lives only
    in VMEM (f32 accumulator scratch), never in HBM.
    """
    M, H = x.shape
    F = w1_bf16.shape[1]
    tm = _tile(M, _ROW_TILE_CAP, 8)
    tf = _tile(F, _F_TILE_CAP, 128)
    return pl.pallas_call(
        _mlp_res_ln_kernel,
        out_shape=jax.ShapeDtypeStruct((M, H), jnp.float32),
        grid=(M // tm, F // tf),
        in_specs=[pl.BlockSpec((tm, H), lambda i, f: (i, 0)),   # x: resident across f
                  pl.BlockSpec((H, tf), lambda i, f: (0, f)),
                  pl.BlockSpec((1, tf), lambda i, f: (0, f)),
                  pl.BlockSpec((tf, H), lambda i, f: (f, 0)),
                  pl.BlockSpec((1, H), lambda i, f: (0, 0)),
                  pl.BlockSpec((tm, H), lambda i, f: (i, 0)),   # residual: resident across f
                  pl.BlockSpec((1, H), lambda i, f: (0, 0)),
                  pl.BlockSpec((1, H), lambda i, f: (0, 0))],
        out_specs=pl.BlockSpec((tm, H), lambda i, f: (i, 0)),
        scratch_shapes=[pltpu.VMEM((tm, H), jnp.float32)],
        compiler_params=_mosaic_params("parallel", "arbitrary"),
    )(x, w1_bf16, b1.reshape(1, F), w2_bf16, b2.reshape(1, H),
      residual, g.reshape(1, H), beta.reshape(1, H))


def _pool_normalize_kernel(x_ref, m_ref, o_ref):
    # masked mean-pool over S, then L2 normalize over H (== F.normalize(p=2, dim=1)).
    x = x_ref[0]                                              # (S, H) f32
    m = m_ref[0]                                              # (S, 1) f32, 1.0 = keep
    summed = jnp.sum(x * m, axis=0, keepdims=True)            # (1, H) masked sum on VPU
    denom = jnp.maximum(jnp.sum(m), 1.0)                      # guard fully-masked rows
    pooled = summed / denom
    nsq = jnp.sum(pooled * pooled)
    o_ref[0] = pooled * jax.lax.rsqrt(jnp.maximum(nsq, 1e-24))   # == clamp ||x|| at 1e-12


def mean_pool_normalize(hidden, mask_col):
    # Gridded over B: each step touches only one (S, H) slab.
    # TODO(synk): for very long S (or B=1 on v7x), add an S-tile grid axis with a VMEM accumulator.
    B, S, H = hidden.shape
    out = pl.pallas_call(
        _pool_normalize_kernel,
        out_shape=jax.ShapeDtypeStruct((B, 1, H), jnp.float32),
        grid=(B,),
        in_specs=[pl.BlockSpec((1, S, H), lambda b: (b, 0, 0)),
                  pl.BlockSpec((1, S, 1), lambda b: (b, 0, 0))],
        out_specs=pl.BlockSpec((1, 1, H), lambda b: (b, 0, 0)),
        compiler_params=_mosaic_params("parallel"),
    )(hidden, mask_col)
    return out.reshape(B, H)


# ---------------------------------------------------------------------------
# Parameter init (deterministic, synthetic) + one-time inference prep
# ---------------------------------------------------------------------------

def init_params(key, vocab, max_pos, H, L, F):
    def nrm(k, shape):
        return 0.02 * jax.random.normal(k, shape, dtype=jnp.float32)

    keys = jax.random.split(key, 2 + L)
    params = {
        "word_emb": nrm(keys[0], (vocab, H)),
        "pos_emb": nrm(keys[1], (max_pos, H)),
        "emb_ln_g": jnp.ones((H,), jnp.float32),
        "emb_ln_b": jnp.zeros((H,), jnp.float32),
        "layers": [],
    }
    for l in range(L):
        ks = jax.random.split(keys[2 + l], 6)
        params["layers"].append({
            "wq": nrm(ks[0], (H, H)), "bq": jnp.zeros((H,), jnp.float32),
            "wk": nrm(ks[1], (H, H)), "bk": jnp.zeros((H,), jnp.float32),
            "wv": nrm(ks[2], (H, H)), "bv": jnp.zeros((H,), jnp.float32),
            "wo": nrm(ks[3], (H, H)), "bo": jnp.zeros((H,), jnp.float32),
            "ln1_g": jnp.ones((H,), jnp.float32), "ln1_b": jnp.zeros((H,), jnp.float32),
            "w1": nrm(ks[4], (H, F)), "b1": jnp.zeros((F,), jnp.float32),
            "w2": nrm(ks[5], (F, H)), "b2": jnp.zeros((H,), jnp.float32),
            "ln2_g": jnp.ones((H,), jnp.float32), "ln2_b": jnp.zeros((H,), jnp.float32),
        })
    return params


def prepare_params(raw):
    """One-time inference prep OUTSIDE jit: bf16 matmul weights, fused Q/K/V weight.
    Biases / layernorm params / embeddings stay f32."""
    bf = lambda w: w.astype(jnp.bfloat16)
    layers = []
    for layer in raw["layers"]:
        layers.append({
            "wqkv": jnp.concatenate([layer["wq"], layer["wk"], layer["wv"]],
                                    axis=1).astype(jnp.bfloat16),
            "bqkv": jnp.concatenate([layer["bq"], layer["bk"], layer["bv"]], axis=0),
            "wo": bf(layer["wo"]), "bo": layer["bo"],
            "ln1_g": layer["ln1_g"], "ln1_b": layer["ln1_b"],
            "w1": bf(layer["w1"]), "b1": layer["b1"],
            "w2": bf(layer["w2"]), "b2": layer["b2"],
            "ln2_g": layer["ln2_g"], "ln2_b": layer["ln2_b"],
        })
    return {
        "word_emb": raw["word_emb"],
        "pos_emb": raw["pos_emb"],
        "emb_ln_g": raw["emb_ln_g"],
        "emb_ln_b": raw["emb_ln_b"],
        "layers": layers,
    }


# ---------------------------------------------------------------------------
# Forward pass
# ---------------------------------------------------------------------------

def nomic_embedding_forward(params, input_ids, attention_mask, nH):
    B, S = input_ids.shape
    H = params["word_emb"].shape[1]
    mask_f = attention_mask.astype(jnp.float32)
    neg_bias = ((1.0 - mask_f) * jnp.float32(-1e9)).reshape(B, 1, S)   # additive attn mask
    mask_col = mask_f.reshape(B, S, 1)                                 # pooling mask

    # embeddings (lookup is glue; layernorm is a Pallas kernel)
    x = jnp.take(params["word_emb"], input_ids, axis=0) + params["pos_emb"][None, :S, :]
    xf = layernorm(x.reshape(B * S, H), params["emb_ln_g"], params["emb_ln_b"])

    for p in params["layers"]:
        # fused QKV projection (one launch, xf read once, bf16 outputs, scale in q)
        q, k, v = qkv_projection(xf, p["wqkv"], p["bqkv"], nH)
        q = q.reshape(B, S, H)
        k = k.reshape(B, S, H)
        v = v.reshape(B, S, H)
        a = attention(q, k, v, neg_bias, nH).reshape(B * S, H)   # bf16, no transposes
        # fused: layernorm(xf + a @ wo + bo)
        xf = linear_residual_layernorm(a, p["wo"], p["bo"], xf, p["ln1_g"], p["ln1_b"])
        # fully fused MLP: layernorm(xf + gelu(xf @ w1 + b1) @ w2 + b2)
        xf = mlp_residual_layernorm(xf, p["w1"], p["b1"], p["w2"], p["b2"],
                                    xf, p["ln2_g"], p["ln2_b"])

    hidden = xf.reshape(B, S, H)                 # == output[0] (last_hidden_state)
    # wrapper-specific part: mean_pool(output[0], attention_mask) then L2-normalize (dim=1)
    return mean_pool_normalize(hidden, mask_col)


# ---------------------------------------------------------------------------

if __name__ == "__main__":
    B, S, H, nH, L, F = 2, 8, 32, 2, 2, 64
    vocab, max_pos = 100, 16

    key = jax.random.PRNGKey(0)
    pkey, ikey = jax.random.split(key)
    params = prepare_params(init_params(pkey, vocab, max_pos, H, L, F))  # prep once, outside jit

    input_ids = jax.random.randint(ikey, (B, S), 0, vocab, dtype=jnp.int32)
    attention_mask = jnp.array(
        [[1, 1, 1, 1, 1, 1, 0, 0],
         [1, 1, 1, 1, 0, 0, 0, 0]], dtype=jnp.int32)

    fwd = jax.jit(functools.partial(nomic_embedding_forward, nH=nH))
    out = fwd(params, input_ids, attention_mask)
    out = jax.block_until_ready(out)

    assert out.shape == (B, H)
    assert bool(jnp.all(jnp.isfinite(out)))
    norms = jnp.sqrt(jnp.sum(out * out, axis=1))
    assert bool(jnp.all(jnp.abs(norms - 1.0) < 1e-3)), norms  # rows are unit-norm
    print("KERNEL_OK")
</pallas_src>

<mosaic_0001>
module attributes {stable_mosaic.version = 11 : i64} {
  func.func @_layernorm_kernel(%arg0: i32, %arg1: memref<16x32xf32, #tpu.memory_space<vmem>>, %arg2: memref<1x32xf32, #tpu.memory_space<vmem>>, %arg3: memref<1x32xf32, #tpu.memory_space<vmem>>, %arg4: memref<16x32xf32, #tpu.memory_space<vmem>>) attributes {dimension_semantics = [#tpu.dimension_semantics<parallel>], iteration_bounds = array<i64: 1>, scalar_prefetch = 0 : i64, scratch_operands = 0 : i64, tpu.core_type = #tpu.core_type<tc>, window_params = [{transform_indices = @transform_0, window_bounds = array<i64: 16, 32>}, {pipeline_mode = #tpu.pipeline_mode<synchronous>, transform_indices = @transform_1, window_bounds = array<i64: 1, 32>}, {pipeline_mode = #tpu.pipeline_mode<synchronous>, transform_indices = @transform_2, window_bounds = array<i64: 1, 32>}, {transform_indices = @transform_3, window_bounds = array<i64: 16, 32>}]} {
    %c0 = arith.constant 0 : index
    %c0_0 = arith.constant 0 : index
    %0 = vector.load %arg1[%c0, %c0_0] : memref<16x32xf32, #tpu.memory_space<vmem>>, vector<16x32xf32>
    %cst = arith.constant dense<0.000000e+00> : vector<16xf32>
    %1 = vector.multi_reduction <add>, %0, %cst [1] : vector<16x32xf32> to vector<16xf32>
    %2 = vector.shape_cast %1 : vector<16xf32> to vector<16x1xf32>
    %cst_1 = arith.constant 3.200000e+01 : f32
    %3 = vector.broadcast %cst_1 : f32 to vector<16x1xf32>
    %4 = arith.divf %2, %3 : vector<16x1xf32>
    %5 = vector.broadcast %4 : vector<16x1xf32> to vector<16x32xf32>
    %6 = arith.subf %0, %5 : vector<16x32xf32>
    %7 = arith.mulf %6, %6 : vector<16x32xf32>
    %cst_2 = arith.constant dense<0.000000e+00> : vector<16xf32>
    %8 = vector.multi_reduction <add>, %7, %cst_2 [1] : vector<16x32xf32> to vector<16xf32>
    %9 = vector.shape_cast %8 : vector<16xf32> to vector<16x1xf32>
    %cst_3 = arith.constant 3.200000e+01 : f32
    %10 = vector.broadcast %cst_3 : f32 to vector<16x1xf32>
    %11 = arith.divf %9, %10 : vector<16x1xf32>
    %12 = vector.broadcast %4 : vector<16x1xf32> to vector<16x32xf32>
    %13 = arith.subf %0, %12 : vector<16x32xf32>
    %cst_4 = arith.constant 9.99999996E-13 : f32
    %14 = vector.broadcast %cst_4 : f32 to vector<16x1xf32>
    %15 = arith.addf %11, %14 : vector<16x1xf32>
    %16 = math.rsqrt %15 : vector<16x1xf32>
    %17 = vector.broadcast %16 : vector<16x1xf32> to vector<16x32xf32>
    %18 = arith.mulf %13, %17 : vector<16x32xf32>
    %c0_5 = arith.constant 0 : index
    %c0_6 = arith.constant 0 : index
    %19 = vector.load %arg2[%c0_5, %c0_6] : memref<1x32xf32, #tpu.memory_space<vmem>>, vector<1x32xf32>
    %20 = vector.broadcast %19 : vector<1x32xf32> to vector<16x32xf32>
    %21 = arith.mulf %18, %20 : vector<16x32xf32>
    %c0_7 = arith.constant 0 : index
    %c0_8 = arith.constant 0 : index
    %22 = vector.load %arg3[%c0_7, %c0_8] : memref<1x32xf32, #tpu.memory_space<vmem>>, vector<1x32xf32>
    %23 = vector.broadcast %22 : vector<1x32xf32> to vector<16x32xf32>
    %24 = arith.addf %21, %23 : vector<16x32xf32>
    %c0_9 = arith.constant 0 : index
    %c0_10 = arith.constant 0 : index
    %25 = vector.load %arg4[%c0_9, %c0_10] : memref<16x32xf32, #tpu.memory_space<vmem>>, vector<16x32xf32>
    tpu.vector_store %arg4[%c0_9, %c0_10], %24 {strides = array<i32>} : memref<16x32xf32, #tpu.memory_space<vmem>>, vector<16x32xf32>,
    return
  }
  func.func @transform_0(%arg0: i32) -> (i32, i32) {
    %c0_i32 = arith.constant 0 : i32
    %c0_i32_0 = arith.constant 0 : i32
    return %arg0, %c0_i32 : i32, i32
  }
  func.func @transform_1(%arg0: i32) -> (i32, i32) {
    %c0_i32 = arith.constant 0 : i32
    %c0_i32_0 = arith.constant 0 : i32
    %c0_i32_1 = arith.constant 0 : i32
    return %c0_i32, %c0_i32_0 : i32, i32
  }
  func.func @transform_2(%arg0: i32) -> (i32, i32) {
    %c0_i32 = arith.constant 0 : i32
    %c0_i32_0 = arith.constant 0 : i32
    %c0_i32_1 = arith.constant 0 : i32
    return %c0_i32, %c0_i32_0 : i32, i32
  }
  func.func @transform_3(%arg0: i32) -> (i32, i32) {
    %c0_i32 = arith.constant 0 : i32
    %c0_i32_0 = arith.constant 0 : i32
    return %arg0, %c0_i32 : i32, i32
  }
}

module attributes {stable_mosaic.version = 11 : i64} {
  func.func @_qkv_kernel(%arg0: i32, %arg1: memref<16x32xf32, #tpu.memory_space<vmem>>, %arg2: memref<32x96xbf16, #tpu.memory_space<vmem>>, %arg3: memref<1x96xf32, #tpu.memory_space<vmem>>, %arg4: memref<16x32xbf16, #tpu.memory_space<vmem>>, %arg5: memref<16x32xbf16, #tpu.memory_space<vmem>>, %arg6: memref<16x32xbf16, #tpu.memory_space<vmem>>) attributes {dimension_semantics = [#tpu.dimension_semantics<parallel>], iteration_bounds = array<i64: 1>, scalar_prefetch = 0 : i64, scratch_operands = 0 : i64, tpu.core_type = #tpu.core_type<tc>, window_params = [{transform_indices = @transform_0, window_bounds = array<i64: 16, 32>}, {pipeline_mode = #tpu.pipeline_mode<synchronous>, transform_indices = @transform_1, window_bounds = array<i64: 32, 96>}, {pipeline_mode = #tpu.pipeline_mode<synchronous>, transform_indices = @transform_2, window_bounds = array<i64: 1, 96>}, {transform_indices = @transform_3, window_bounds = array<i64: 16, 32>}, {transform_indices = @transform_4, window_bounds = array<i64: 16, 32>}, {transform_indices = @transform_5, window_bounds = array<i64: 16, 32>}]} {
    %c0 = arith.constant 0 : index
    %c0_0 = arith.constant 0 : index
    %0 = vector.load %arg1[%c0, %c0_0] : memref<16x32xf32, #tpu.memory_space<vmem>>, vector<16x32xf32>
    %1 = arith.truncf %0 : vector<16x32xf32> to vector<16x32xbf16>
    %c0_1 = arith.constant 0 : index
    %c0_2 = arith.constant 0 : index
    %2 = vector.load %arg2[%c0_1, %c0_2] : memref<32x96xbf16, #tpu.memory_space<vmem>>, vector<32x96xbf16>
    %cst = arith.constant dense<0.000000e+00> : vector<16x96xf32>
    %3 = tpu.matmul %1, %2, %cst {dimension_numbers = #tpu.dot_dimension_numbers<[1], [0], [0], [1], [0, 0, 1, 1], [], []>} : vector<16x32xbf16>, vector<32x96xbf16>, vector<16x96xf32> -> vector<16x96xf32>
    %c0_3 = arith.constant 0 : index
    %c0_4 = arith.constant 0 : index
    %4 = vector.load %arg3[%c0_3, %c0_4] : memref<1x96xf32, #tpu.memory_space<vmem>>, vector<1x96xf32>
    %5 = vector.broadcast %4 : vector<1x96xf32> to vector<16x96xf32>
    %6 = arith.addf %3, %5 : vector<16x96xf32>
    %7 = vector.extract_strided_slice %6 {offsets = [0, 0], sizes = [16, 32], strides = [1, 1]} : vector<16x96xf32> to vector<16x32xf32>
    %cst_5 = arith.constant 2.500000e-01 : f32
    %8 = vector.broadcast %cst_5 : f32 to vector<16x32xf32>
    %9 = arith.mulf %7, %8 : vector<16x32xf32>
    %10 = arith.truncf %9 : vector<16x32xf32> to vector<16x32xbf16>
    %c0_6 = arith.constant 0 : index
    %c0_7 = arith.constant 0 : index
    %11 = vector.load %arg4[%c0_6, %c0_7] : memref<16x32xbf16, #tpu.memory_space<vmem>>, vector<16x32xbf16>
    tpu.vector_store %arg4[%c0_6, %c0_7], %10 {strides = array<i32>} : memref<16x32xbf16, #tpu.memory_space<vmem>>, vector<16x32xbf16>,
    %12 = vector.extract_strided_slice %6 {offsets = [0, 32], sizes = [16, 32], strides = [1, 1]} : vector<16x96xf32> to vector<16x32xf32>
    %13 = arith.truncf %12 : vector<16x32xf32> to vector<16x32xbf16>
    %c0_8 = arith.constant 0 : index
    %c0_9 = arith.constant 0 : index
    %14 = vector.load %arg5[%c0_8, %c0_9] : memref<16x32xbf16, #tpu.memory_space<vmem>>, vector<16x32xbf16>
    tpu.vector_store %arg5[%c0_8, %c0_9], %13 {strides = array<i32>} : memref<16x32xbf16, #tpu.memory_space<vmem>>, vector<16x32xbf16>,
    %15 = vector.extract_strided_slice %6 {offsets = [0, 64], sizes = [16, 32], strides = [1, 1]} : vector<16x96xf32> to vector<16x32xf32>
    %16 = arith.truncf %15 : vector<16x32xf32> to vector<16x32xbf16>
    %c0_10 = arith.constant 0 : index
    %c0_11 = arith.constant 0 : index
    %17 = vector.load %arg6[%c0_10, %c0_11] : memref<16x32xbf16, #tpu.memory_space<vmem>>, vector<16x32xbf16>
    tpu.vector_store %arg6[%c0_10, %c0_11], %16 {strides = array<i32>} : memref<16x32xbf16, #tpu.memory_space<vmem>>, vector<16x32xbf16>,
    return
  }
  func.func @transform_0(%arg0: i32) -> (i32, i32) {
    %c0_i32 = arith.constant 0 : i32
    %c0_i32_0 = arith.constant 0 : i32
    return %arg0, %c0_i32 : i32, i32
  }
  func.func @transform_1(%arg0: i32) -> (i32, i32) {
    %c0_i32 = arith.constant 0 : i32
    %c0_i32_0 = arith.constant 0 : i32
    %c0_i32_1 = arith.constant 0 : i32
    return %c0_i32, %c0_i32_0 : i32, i32
  }
  func.func @transform_2(%arg0: i32) -> (i32, i32) {
    %c0_i32 = arith.constant 0 : i32
    %c0_i32_0 = arith.constant 0 : i32
    %c0_i32_1 = arith.constant 0 : i32
    return %c0_i32, %c0_i32_0 : i32, i32
  }
  func.func @transform_3(%arg0: i32) -> (i32, i32) {
    %c0_i32 = arith.constant 0 : i32
    %c0_i32_0 = arith.constant 0 : i32
    return %arg0, %c0_i32 : i32, i32
  }
  func.func @transform_4(%arg0: i32) -> (i32, i32) {
    %c0_i32 = arith.constant 0 : i32
    %c0_i32_0 = arith.constant 0 : i32
    return %arg0, %c0_i32 : i32, i32
  }
  func.func @transform_5(%arg0: i32) -> (i32, i32) {
    %c0_i32 = arith.constant 0 : i32
    %c0_i32_0 = arith.constant 0 : i32
    return %arg0, %c0_i32 : i32, i32
  }
}

module attributes {stable_mosaic.version = 11 : i64} {
  func.func @_linear_res_ln_kernel(%arg0: i32, %arg1: memref<16x32xbf16, #tpu.memory_space<vmem>>, %arg2: memref<32x32xbf16, #tpu.memory_space<vmem>>, %arg3: memref<1x32xf32, #tpu.memory_space<vmem>>, %arg4: memref<16x32xf32, #tpu.memory_space<vmem>>, %arg5: memref<1x32xf32, #tpu.memory_space<vmem>>, %arg6: memref<1x32xf32, #tpu.memory_space<vmem>>, %arg7: memref<16x32xf32, #tpu.memory_space<vmem>>) attributes {dimension_semantics = [#tpu.dimension_semantics<parallel>], iteration_bounds = array<i64: 1>, scalar_prefetch = 0 : i64, scratch_operands = 0 : i64, tpu.core_type = #tpu.core_type<tc>, window_params = [{transform_indices = @transform_0, window_bounds = array<i64: 16, 32>}, {pipeline_mode = #tpu.pipeline_mode<synchronous>, transform_indices = @transform_1, window_bounds = array<i64: 32, 32>}, {pipeline_mode = #tpu.pipeline_mode<synchronous>, transform_indices = @transform_2, window_bounds = array<i64: 1, 32>}, {transform_indices = @transform_3, window_bounds = array<i64: 16, 32>}, {pipeline_mode = #tpu.pipeline_mode<synchronous>, transform_indices = @transform_4, window_bounds = array<i64: 1, 32>}, {pipeline_mode = #tpu.pipeline_mode<synchronous>, transform_indices = @transform_5, window_bounds = array<i64: 1, 32>}, {transform_indices = @transform_6, window_bounds = array<i64: 16, 32>}]} {
    %c0 = arith.constant 0 : index
    %c0_0 = arith.constant 0 : index
    %0 = vector.load %arg1[%c0, %c0_0] : memref<16x32xbf16, #tpu.memory_space<vmem>>, vector<16x32xbf16>
    %c0_1 = arith.constant 0 : index
    %c0_2 = arith.constant 0 : index
    %1 = vector.load %arg2[%c0_1, %c0_2] : memref<32x32xbf16, #tpu.memory_space<vmem>>, vector<32x32xbf16>
    %cst = arith.constant dense<0.000000e+00> : vector<16x32xf32>
    %2 = tpu.matmul %0, %1, %cst {dimension_numbers = #tpu.dot_dimension_numbers<[1], [0], [0], [1], [0, 0, 1, 1], [], []>} : vector<16x32xbf16>, vector<32x32xbf16>, vector<16x32xf32> -> vector<16x32xf32>
    %c0_3 = arith.constant 0 : index
    %c0_4 = arith.constant 0 : index
    %3 = vector.load %arg3[%c0_3, %c0_4] : memref<1x32xf32, #tpu.memory_space<vmem>>, vector<1x32xf32>
    %4 = vector.broadcast %3 : vector<1x32xf32> to vector<16x32xf32>
    %5 = arith.addf %2, %4 : vector<16x32xf32>
    %c0_5 = arith.constant 0 : index
    %c0_6 = arith.constant 0 : index
    %6 = vector.load %arg4[%c0_5, %c0_6] : memref<16x32xf32, #tpu.memory_space<vmem>>, vector<16x32xf32>
    %7 = arith.addf %5, %6 : vector<16x32xf32>
    %cst_7 = arith.constant dense<0.000000e+00> : vector<16xf32>
    %8 = vector.multi_reduction <add>, %7, %cst_7 [1] : vector<16x32xf32> to vector<16xf32>
    %9 = vector.shape_cast %8 : vector<16xf32> to vector<16x1xf32>
    %cst_8 = arith.constant 3.200000e+01 : f32
    %10 = vector.broadcast %cst_8 : f32 to vector<16x1xf32>
    %11 = arith.divf %9, %10 : vector<16x1xf32>
    %12 = vector.broadcast %11 : vector<16x1xf32> to vector<16x32xf32>
    %13 = arith.subf %7, %12 : vector<16x32xf32>
    %14 = arith.mulf %13, %13 : vector<16x32xf32>
    %cst_9 = arith.constant dense<0.000000e+00> : vector<16xf32>
    %15 = vector.multi_reduction <add>, %14, %cst_9 [1] : vector<16x32xf32> to vector<16xf32>
    %16 = vector.shape_cast %15 : vector<16xf32> to vector<16x1xf32>
    %cst_10 = arith.constant 3.200000e+01 : f32
    %17 = vector.broadcast %cst_10 : f32 to vector<16x1xf32>
    %18 = arith.divf %16, %17 : vector<16x1xf32>
    %19 = vector.broadcast %11 : vector<16x1xf32> to vector<16x32xf32>
    %20 = arith.subf %7, %19 : vector<16x32xf32>
    %cst_11 = arith.constant 9.99999996E-13 : f32
    %21 = vector.broadcast %cst_11 : f32 to vector<16x1xf32>
    %22 = arith.addf %18, %21 : vector<16x1xf32>
    %23 = math.rsqrt %22 : vector<16x1xf32>
    %24 = vector.broadcast %23 : vector<16x1xf32> to vector<16x32xf32>
    %25 = arith.mulf %20, %24 : vector<16x32xf32>
    %c0_12 = arith.constant 0 : index
    %c0_13 = arith.constant 0 : index
    %26 = vector.load %arg5[%c0_12, %c0_13] : memref<1x32xf32, #tpu.memory_space<vmem>>, vector<1x32xf32>
    %27 = vector.broadcast %26 : vector<1x32xf32> to vector<16x32xf32>
    %28 = arith.mulf %25, %27 : vector<16x32xf32>
    %c0_14 = arith.constant 0 : index
    %c0_15 = arith.constant 0 : index
    %29 = vector.load %arg6[%c0_14, %c0_15] : memref<1x32xf32, #tpu.memory_space<vmem>>, vector<1x32xf32>
    %30 = vector.broadcast %29 : vector<1x32xf32> to vector<16x32xf32>
    %31 = arith.addf %28, %30 : vector<16x32xf32>
    %c0_16 = arith.constant 0 : index
    %c0_17 = arith.constant 0 : index
    %32 = vector.load %arg7[%c0_16, %c0_17] : memref<16x32xf32, #tpu.memory_space<vmem>>, vector<16x32xf32>
    tpu.vector_store %arg7[%c0_16, %c0_17], %31 {strides = array<i32>} : memref<16x32xf32, #tpu.memory_space<vmem>>, vector<16x32xf32>,
    return
  }
  func.func @transform_0(%arg0: i32) -> (i32, i32) {
    %c0_i32 = arith.constant 0 : i32
    %c0_i32_0 = arith.constant 0 : i32
    return %arg0, %c0_i32 : i32, i32
  }
  func.func @transform_1(%arg0: i32) -> (i32, i32) {
    %c0_i32 = arith.constant 0 : i32
    %c0_i32_0 = arith.constant 0 : i32
    %c0_i32_1 = arith.constant 0 : i32
    return %c0_i32, %c0_i32_0 : i32, i32
  }
  func.func @transform_2(%arg0: i32) -> (i32, i32) {
    %c0_i32 = arith.constant 0 : i32
    %c0_i32_0 = arith.constant 0 : i32
    %c0_i32_1 = arith.constant 0 : i32
    return %c0_i32, %c0_i32_0 : i32, i32
  }
  func.func @transform_3(%arg0: i32) -> (i32, i32) {
    %c0_i32 = arith.constant 0 : i32
    %c0_i32_0 = arith.constant 0 : i32
    return %arg0, %c0_i32 : i32, i32
  }
  func.func @transform_4(%arg0: i32) -> (i32, i32) {
    %c0_i32 = arith.constant 0 : i32
    %c0_i32_0 = arith.constant 0 : i32
    %c0_i32_1 = arith.constant 0 : i32
    return %c0_i32, %c0_i32_0 : i32, i32
  }
  func.func @transform_5(%arg0: i32) -> (i32, i32) {
    %c0_i32 = arith.constant 0 : i32
    %c0_i32_0 = arith.constant 0 : i32
    %c0_i32_1 = arith.constant 0 : i32
    return %c0_i32, %c0_i32_0 : i32, i32
  }
  func.func @transform_6(%arg0: i32) -> (i32, i32) {
    %c0_i32 = arith.constant 0 : i32
    %c0_i32_0 = arith.constant 0 : i32
    return %arg0, %c0_i32 : i32, i32
  }
}

module attributes {stable_mosaic.version = 11 : i64} {
  func.func @_attention_kernel(%arg0: i32, %arg1: memref<1x8x32xbf16, #tpu.memory_space<vmem>>, %arg2: memref<1x8x32xbf16, #tpu.memory_space<vmem>>, %arg3: memref<1x8x32xbf16, #tpu.memory_space<vmem>>, %arg4: memref<1x1x8xf32, #tpu.memory_space<vmem>>, %arg5: memref<1x8x32xbf16, #tpu.memory_space<vmem>>) attributes {dimension_semantics = [#tpu.dimension_semantics<parallel>], iteration_bounds = array<i64: 2>, scalar_prefetch = 0 : i64, scratch_operands = 0 : i64, tpu.core_type = #tpu.core_type<tc>, window_params = [{transform_indices = @transform_0, window_bounds = array<i64: 1, 8, 32>}, {transform_indices = @transform_1, window_bounds = array<i64: 1, 8, 32>}, {transform_indices = @transform_2, window_bounds = array<i64: 1, 8, 32>}, {transform_indices = @transform_3, window_bounds = array<i64: 1, 1, 8>}, {transform_indices = @transform_4, window_bounds = array<i64: 1, 8, 32>}]} {
    %c0 = arith.constant 0 : index
    %c0_0 = arith.constant 0 : index
    %c0_1 = arith.constant 0 : index
    %0 = vector.load %arg4[%c0, %c0_0, %c0_1] : memref<1x1x8xf32, #tpu.memory_space<vmem>>, vector<1x1x8xf32>
    %1 = vector.shape_cast %0 : vector<1x1x8xf32> to vector<1x8xf32>
    %c0_2 = arith.constant 0 : index
    %c0_3 = arith.constant 0 : index
    %c0_4 = arith.constant 0 : index
    %2 = vector.load %arg1[%c0_2, %c0_3, %c0_4] : memref<1x8x32xbf16, #tpu.memory_space<vmem>>, vector<1x8x16xbf16>
    %3 = vector.shape_cast %2 : vector<1x8x16xbf16> to vector<8x16xbf16>
    %c0_5 = arith.constant 0 : index
    %c0_6 = arith.constant 0 : index
    %c0_7 = arith.constant 0 : index
    %4 = vector.load %arg2[%c0_5, %c0_6, %c0_7] : memref<1x8x32xbf16, #tpu.memory_space<vmem>>, vector<1x8x16xbf16>
    %5 = vector.shape_cast %4 : vector<1x8x16xbf16> to vector<8x16xbf16>
    %c0_8 = arith.constant 0 : index
    %c0_9 = arith.constant 0 : index
    %c0_10 = arith.constant 0 : index
    %6 = vector.load %arg3[%c0_8, %c0_9, %c0_10] : memref<1x8x32xbf16, #tpu.memory_space<vmem>>, vector<1x8x16xbf16>
    %7 = vector.shape_cast %6 : vector<1x8x16xbf16> to vector<8x16xbf16>
    %cst = arith.constant dense<0.000000e+00> : vector<8x8xf32>
    %8 = tpu.matmul %3, %5, %cst {dimension_numbers = #tpu.dot_dimension_numbers<[1], [1], [0], [0], [0, 0, 1, 0], [], []>} : vector<8x16xbf16>, vector<8x16xbf16>, vector<8x8xf32> -> vector<8x8xf32>
    %9 = vector.broadcast %1 : vector<1x8xf32> to vector<8x8xf32>
    %10 = arith.addf %8, %9 : vector<8x8xf32>
    %cst_11 = arith.constant dense<0xFF800000> : vector<8xf32>
    %11 = vector.multi_reduction <maximumf>, %10, %cst_11 [1] : vector<8x8xf32> to vector<8xf32>
    %12 = vector.shape_cast %11 : vector<8xf32> to vector<8x1xf32>
    %13 = vector.broadcast %12 : vector<8x1xf32> to vector<8x8xf32>
    %14 = arith.subf %10, %13 : vector<8x8xf32>
    %15 = math.exp %14 : vector<8x8xf32>
    %cst_12 = arith.constant dense<0.000000e+00> : vector<8xf32>
    %16 = vector.multi_reduction <add>, %15, %cst_12 [1] : vector<8x8xf32> to vector<8xf32>
    %17 = vector.shape_cast %16 : vector<8xf32> to vector<8x1xf32>
    %18 = arith.truncf %15 : vector<8x8xf32> to vector<8x8xbf16>
    %cst_13 = arith.constant dense<0.000000e+00> : vector<8x16xf32>
    %19 = tpu.matmul %18, %7, %cst_13 {dimension_numbers = #tpu.dot_dimension_numbers<[1], [0], [0], [1], [0, 0, 1, 1], [], []>} : vector<8x8xbf16>, vector<8x16xbf16>, vector<8x16xf32> -> vector<8x16xf32>
    %20 = tpu.reciprocal %17 {approx = true} : vector<8x1xf32> -> vector<8x1xf32>
    %21 = vector.broadcast %20 : vector<8x1xf32> to vector<8x16xf32>
    %22 = arith.mulf %19, %21 : vector<8x16xf32>
    %23 = arith.truncf %22 : vector<8x16xf32> to vector<8x16xbf16>
    %c0_14 = arith.constant 0 : index
    %c0_15 = arith.constant 0 : index
    %c0_16 = arith.constant 0 : index
    %24 = vector.load %arg5[%c0_14, %c0_15, %c0_16] : memref<1x8x32xbf16, #tpu.memory_space<vmem>>, vector<1x8x16xbf16>
    %25 = vector.shape_cast %24 : vector<1x8x16xbf16> to vector<8x16xbf16>
    %26 = vector.shape_cast %23 : vector<8x16xbf16> to vector<1x8x16xbf16>
    tpu.vector_store %arg5[%c0_14, %c0_15, %c0_16], %26 {strides = array<i32>} : memref<1x8x32xbf16, #tpu.memory_space<vmem>>, vector<1x8x16xbf16>,
    %c0_17 = arith.constant 0 : index
    %c0_18 = arith.constant 0 : index
    %c16 = arith.constant 16 : index
    %27 = vector.load %arg1[%c0_17, %c0_18, %c16] : memref<1x8x32xbf16, #tpu.memory_space<vmem>>, vector<1x8x16xbf16>
    %28 = vector.shape_cast %27 : vector<1x8x16xbf16> to vector<8x16xbf16>
    %c0_19 = arith.constant 0 : index
    %c0_20 = arith.constant 0 : index
    %c16_21 = arith.constant 16 : index
    %29 = vector.load %arg2[%c0_19, %c0_20, %c16_21] : memref<1x8x32xbf16, #tpu.memory_space<vmem>>, vector<1x8x16xbf16>
    %30 = vector.shape_cast %29 : vector<1x8x16xbf16> to vector<8x16xbf16>
    %c0_22 = arith.constant 0 : index
    %c0_23 = arith.constant 0 : index
    %c16_24 = arith.constant 16 : index
    %31 = vector.load %arg3[%c0_22, %c0_23, %c16_24] : memref<1x8x32xbf16, #tpu.memory_space<vmem>>, vector<1x8x16xbf16>
    %32 = vector.shape_cast %31 : vector<1x8x16xbf16> to vector<8x16xbf16>
    %cst_25 = arith.constant dense<0.000000e+00> : vector<8x8xf32>
    %33 = tpu.matmul %28, %30, %cst_25 {dimension_numbers = #tpu.dot_dimension_numbers<[1], [1], [0], [0], [0, 0, 1, 0], [], []>} : vector<8x16xbf16>, vector<8x16xbf16>, vector<8x8xf32> -> vector<8x8xf32>
    %34 = vector.broadcast %1 : vector<1x8xf32> to vector<8x8xf32>
    %35 = arith.addf %33, %34 : vector<8x8xf32>
    %cst_26 = arith.constant dense<0xFF800000> : vector<8xf32>
    %36 = vector.multi_reduction <maximumf>, %35, %cst_26 [1] : vector<8x8xf32> to vector<8xf32>
    %37 = vector.shape_cast %36 : vector<8xf32> to vector<8x1xf32>
    %38 = vector.broadcast %37 : vector<8x1xf32> to vector<8x8xf32>
    %39 = arith.subf %35, %38 : vector<8x8xf32>
    %40 = math.exp %39 : vector<8x8xf32>
    %cst_27 = arith.constant dense<0.000000e+00> : vector<8xf32>
    %41 = vector.multi_reduction <add>, %40, %cst_27 [1] : vector<8x8xf32> to vector<8xf32>
    %42 = vector.shape_cast %41 : vector<8xf32> to vector<8x1xf32>
    %43 = arith.truncf %40 : vector<8x8xf32> to vector<8x8xbf16>
    %cst_28 = arith.constant dense<0.000000e+00> : vector<8x16xf32>
    %44 = tpu.matmul %43, %32, %cst_28 {dimension_numbers = #tpu.dot_dimension_numbers<[1], [0], [0], [1], [0, 0, 1, 1], [], []>} : vector<8x8xbf16>, vector<8x16xbf16>, vector<8x16xf32> -> vector<8x16xf32>
    %45 = tpu.reciprocal %42 {approx = true} : vector<8x1xf32> -> vector<8x1xf32>
    %46 = vector.broadcast %45 : vector<8x1xf32> to vector<8x16xf32>
    %47 = arith.mulf %44, %46 : vector<8x16xf32>
    %48 = arith.truncf %47 : vector<8x16xf32> to vector<8x16xbf16>
    %c0_29 = arith.constant 0 : index
    %c0_30 = arith.constant 0 : index
    %c16_31 = arith.constant 16 : index
    %49 = vector.load %arg5[%c0_29, %c0_30, %c16_31] : memref<1x8x32xbf16, #tpu.memory_space<vmem>>, vector<1x8x16xbf16>
    %50 = vector.shape_cast %49 : vector<1x8x16xbf16> to vector<8x16xbf16>
    %51 = vector.shape_cast %48 : vector<8x16xbf16> to vector<1x8x16xbf16>
    tpu.vector_store %arg5[%c0_29, %c0_30, %c16_31], %51 {strides = array<i32>} : memref<1x8x32xbf16, #tpu.memory_space<vmem>>, vector<1x8x16xbf16>,
    return
  }
  func.func @transform_0(%arg0: i32) -> (i32, i32, i32) {
    %c0_i32 = arith.constant 0 : i32
    %c0_i32_0 = arith.constant 0 : i32
    %c0_i32_1 = arith.constant 0 : i32
    return %arg0, %c0_i32, %c0_i32_0 : i32, i32, i32
  }
  func.func @transform_1(%arg0: i32) -> (i32, i32, i32) {
    %c0_i32 = arith.constant 0 : i32
    %c0_i32_0 = arith.constant 0 : i32
    %c0_i32_1 = arith.constant 0 : i32
    return %arg0, %c0_i32, %c0_i32_0 : i32, i32, i32
  }
  func.func @transform_2(%arg0: i32) -> (i32, i32, i32) {
    %c0_i32 = arith.constant 0 : i32
    %c0_i32_0 = arith.constant 0 : i32
    %c0_i32_1 = arith.constant 0 : i32
    return %arg0, %c0_i32, %c0_i32_0 : i32, i32, i32
  }
  func.func @transform_3(%arg0: i32) -> (i32, i32, i32) {
    %c0_i32 = arith.constant 0 : i32
    %c0_i32_0 = arith.constant 0 : i32
    %c0_i32_1 = arith.constant 0 : i32
    return %arg0, %c0_i32, %c0_i32_0 : i32, i32, i32
  }
  func.func @transform_4(%arg0: i32) -> (i32, i32, i32) {
    %c0_i32 = arith.constant 0 : i32
    %c0_i32_0 = arith.constant 0 : i32
    %c0_i32_1 = arith.constant 0 : i32
    return %arg0, %c0_i32, %c0_i32_0 : i32, i32, i32
  }
}

module attributes {stable_mosaic.version = 11 : i64} {
  func.func @_mlp_res_ln_kernel(%arg0: i32, %arg1: i32, %arg2: memref<16x32xf32, #tpu.memory_space<vmem>>, %arg3: memref<32x64xbf16, #tpu.memory_space<vmem>>, %arg4: memref<1x64xf32, #tpu.memory_space<vmem>>, %arg5: memref<64x32xbf16, #tpu.memory_space<vmem>>, %arg6: memref<1x32xf32, #tpu.memory_space<vmem>>, %arg7: memref<16x32xf32, #tpu.memory_space<vmem>>, %arg8: memref<1x32xf32, #tpu.memory_space<vmem>>, %arg9: memref<1x32xf32, #tpu.memory_space<vmem>>, %arg10: memref<16x32xf32, #tpu.memory_space<vmem>>, %arg11: memref<16x32xf32, #tpu.memory_space<vmem>>) attributes {dimension_semantics = [#tpu.dimension_semantics<parallel>, #tpu.dimension_semantics<arbitrary>], iteration_bounds = array<i64: 1, 1>, scalar_prefetch = 0 : i64, scratch_operands = 1 : i64, tpu.core_type = #tpu.core_type<tc>, window_params = [{transform_indices = @transform_0, window_bounds = array<i64: 16, 32>}, {transform_indices = @transform_1, window_bounds = array<i64: 32, 64>}, {transform_indices = @transform_2, window_bounds = array<i64: 1, 64>}, {transform_indices = @transform_3, window_bounds = array<i64: 64, 32>}, {pipeline_mode = #tpu.pipeline_mode<synchronous>, transform_indices = @transform_4, window_bounds = array<i64: 1, 32>}, {transform_indices = @transform_5, window_bounds = array<i64: 16, 32>}, {pipeline_mode = #tpu.pipeline_mode<synchronous>, transform_indices = @transform_6, window_bounds = array<i64: 1, 32>}, {pipeline_mode = #tpu.pipeline_mode<synchronous>, transform_indices = @transform_7, window_bounds = array<i64: 1, 32>}, {transform_indices = @transform_8, window_bounds = array<i64: 16, 32>}]} {
    %c0_i32 = arith.constant 0 : i32
    %0 = arith.cmpi eq, %arg1, %c0_i32 : i32
    %1 = arith.extui %0 : i1 to i32
    %c0_i32_0 = arith.constant 0 : i32
    %2 = arith.cmpi ne, %1, %c0_i32_0 : i32
    scf.if %2 {
      %cst_19 = arith.constant 0.000000e+00 : f32
      %32 = vector.broadcast %cst_19 : f32 to vector<16x32xf32>
      %c0_20 = arith.constant 0 : index
      %c0_21 = arith.constant 0 : index
      %33 = vector.load %arg11[%c0_20, %c0_21] : memref<16x32xf32, #tpu.memory_space<vmem>>, vector<16x32xf32>
      tpu.vector_store %arg11[%c0_20, %c0_21], %32 {strides = array<i32>} : memref<16x32xf32, #tpu.memory_space<vmem>>, vector<16x32xf32>,
    } else {
    }
    %c0 = arith.constant 0 : index
    %c0_1 = arith.constant 0 : index
    %3 = vector.load %arg2[%c0, %c0_1] : memref<16x32xf32, #tpu.memory_space<vmem>>, vector<16x32xf32>
    %4 = arith.truncf %3 : vector<16x32xf32> to vector<16x32xbf16>
    %c0_2 = arith.constant 0 : index
    %c0_3 = arith.constant 0 : index
    %5 = vector.load %arg3[%c0_2, %c0_3] : memref<32x64xbf16, #tpu.memory_space<vmem>>, vector<32x64xbf16>
    %cst = arith.constant dense<0.000000e+00> : vector<16x64xf32>
    %6 = tpu.matmul %4, %5, %cst {dimension_numbers = #tpu.dot_dimension_numbers<[1], [0], [0], [1], [0, 0, 1, 1], [], []>} : vector<16x32xbf16>, vector<32x64xbf16>, vector<16x64xf32> -> vector<16x64xf32>
    %c0_4 = arith.constant 0 : index
    %c0_5 = arith.constant 0 : index
    %7 = vector.load %arg4[%c0_4, %c0_5] : memref<1x64xf32, #tpu.memory_space<vmem>>, vector<1x64xf32>
    %8 = vector.broadcast %7 : vector<1x64xf32> to vector<16x64xf32>
    %9 = arith.addf %6, %8 : vector<16x64xf32>
    %10 = arith.mulf %9, %9 : vector<16x64xf32>
    %11 = arith.mulf %9, %10 : vector<16x64xf32>
    %cst_6 = arith.constant 4.471500e-02 : f32
    %12 = vector.broadcast %cst_6 : f32 to vector<16x64xf32>
    %13 = arith.mulf %12, %11 : vector<16x64xf32>
    %14 = arith.addf %9, %13 : vector<16x64xf32>
    %cst_7 = arith.constant 0.797884583 : f32
    %15 = vector.broadcast %cst_7 : f32 to vector<16x64xf32>
    %16 = arith.mulf %15, %14 : vector<16x64xf32>
    %17 = math.tanh %16 : vector<16x64xf32>
    %cst_8 = arith.constant 1.000000e+00 : f32
    %18 = vector.broadcast %cst_8 : f32 to vector<16x64xf32>
    %19 = arith.addf %18, %17 : vector<16x64xf32>
    %cst_9 = arith.constant 5.000000e-01 : f32
    %20 = vector.broadcast %cst_9 : f32 to vector<16x64xf32>
    %21 = arith.mulf %20, %19 : vector<16x64xf32>
    %22 = arith.mulf %9, %21 : vector<16x64xf32>
    %c0_10 = arith.constant 0 : index
    %c0_11 = arith.constant 0 : index
    %23 = vector.load %arg11[%c0_10, %c0_11] : memref<16x32xf32, #tpu.memory_space<vmem>>, vector<16x32xf32>
    %24 = arith.truncf %22 : vector<16x64xf32> to vector<16x64xbf16>
    %c0_12 = arith.constant 0 : index
    %c0_13 = arith.constant 0 : index
    %25 = vector.load %arg5[%c0_12, %c0_13] : memref<64x32xbf16, #tpu.memory_space<vmem>>, vector<64x32xbf16>
    %cst_14 = arith.constant dense<0.000000e+00> : vector<16x32xf32>
    %26 = tpu.matmul %24, %25, %cst_14 {dimension_numbers = #tpu.dot_dimension_numbers<[1], [0], [0], [1], [0, 0, 1, 1], [], []>} : vector<16x64xbf16>, vector<64x32xbf16>, vector<16x32xf32> -> vector<16x32xf32>
    %27 = arith.addf %23, %26 : vector<16x32xf32>
    %c0_15 = arith.constant 0 : index
    %c0_16 = arith.constant 0 : index
    %28 = vector.load %arg11[%c0_15, %c0_16] : memref<16x32xf32, #tpu.memory_space<vmem>>, vector<16x32xf32>
    tpu.vector_store %arg11[%c0_15, %c0_16], %27 {strides = array<i32>} : memref<16x32xf32, #tpu.memory_space<vmem>>, vector<16x32xf32>,
    %c0_i32_17 = arith.constant 0 : i32
    %29 = arith.cmpi eq, %arg1, %c0_i32_17 : i32
    %30 = arith.extui %29 : i1 to i32
    %c0_i32_18 = arith.constant 0 : i32
    %31 = arith.cmpi ne, %30, %c0_i32_18 : i32
    scf.if %31 {
      %c0_19 = arith.constant 0 : index
      %c0_20 = arith.constant 0 : index
      %32 = vector.load %arg11[%c0_19, %c0_20] : memref<16x32xf32, #tpu.memory_space<vmem>>, vector<16x32xf32>
      %c0_21 = arith.constant 0 : index
      %c0_22 = arith.constant 0 : index
      %33 = vector.load %arg6[%c0_21, %c0_22] : memref<1x32xf32, #tpu.memory_space<vmem>>, vector<1x32xf32>
      %34 = vector.broadcast %33 : vector<1x32xf32> to vector<16x32xf32>
      %35 = arith.addf %32, %34 : vector<16x32xf32>
      %c0_23 = arith.constant 0 : index
      %c0_24 = arith.constant 0 : index
      %36 = vector.load %arg7[%c0_23, %c0_24] : memref<16x32xf32, #tpu.memory_space<vmem>>, vector<16x32xf32>
      %37 = arith.addf %35, %36 : vector<16x32xf32>
      %cst_25 = arith.constant dense<0.000000e+00> : vector<16xf32>
      %38 = vector.multi_reduction <add>, %37, %cst_25 [1] : vector<16x32xf32> to vector<16xf32>
      %39 = vector.shape_cast %38 : vector<16xf32> to vector<16x1xf32>
      %cst_26 = arith.constant 3.200000e+01 : f32
      %40 = vector.broadcast %cst_26 : f32 to vector<16x1xf32>
      %41 = arith.divf %39, %40 : vector<16x1xf32>
      %42 = vector.broadcast %41 : vector<16x1xf32> to vector<16x32xf32>
      %43 = arith.subf %37, %42 : vector<16x32xf32>
      %44 = arith.mulf %43, %43 : vector<16x32xf32>
      %cst_27 = arith.constant dense<0.000000e+00> : vector<16xf32>
      %45 = vector.multi_reduction <add>, %44, %cst_27 [1] : vector<16x32xf32> to vector<16xf32>
      %46 = vector.shape_cast %45 : vector<16xf32> to vector<16x1xf32>
      %cst_28 = arith.constant 3.200000e+01 : f32
      %47 = vector.broadcast %cst_28 : f32 to vector<16x1xf32>
      %48 = arith.divf %46, %47 : vector<16x1xf32>
      %49 = vector.broadcast %41 : vector<16x1xf32> to vector<16x32xf32>
      %50 = arith.subf %37, %49 : vector<16x32xf32>
      %cst_29 = arith.constant 9.99999996E-13 : f32
      %51 = vector.broadcast %cst_29 : f32 to vector<16x1xf32>
      %52 = arith.addf %48, %51 : vector<16x1xf32>
      %53 = math.rsqrt %52 : vector<16x1xf32>
      %54 = vector.broadcast %53 : vector<16x1xf32> to vector<16x32xf32>
      %55 = arith.mulf %50, %54 : vector<16x32xf32>
      %c0_30 = arith.constant 0 : index
      %c0_31 = arith.constant 0 : index
      %56 = vector.load %arg8[%c0_30, %c0_31] : memref<1x32xf32, #tpu.memory_space<vmem>>, vector<1x32xf32>
      %57 = vector.broadcast %56 : vector<1x32xf32> to vector<16x32xf32>
      %58 = arith.mulf %55, %57 : vector<16x32xf32>
      %c0_32 = arith.constant 0 : index
      %c0_33 = arith.constant 0 : index
      %59 = vector.load %arg9[%c0_32, %c0_33] : memref<1x32xf32, #tpu.memory_space<vmem>>, vector<1x32xf32>
      %60 = vector.broadcast %59 : vector<1x32xf32> to vector<16x32xf32>
      %61 = arith.addf %58, %60 : vector<16x32xf32>
      %c0_34 = arith.constant 0 : index
      %c0_35 = arith.constant 0 : index
      %62 = vector.load %arg10[%c0_34, %c0_35] : memref<16x32xf32, #tpu.memory_space<vmem>>, vector<16x32xf32>
      tpu.vector_store %arg10[%c0_34, %c0_35], %61 {strides = array<i32>} : memref<16x32xf32, #tpu.memory_space<vmem>>, vector<16x32xf32>,
    } else {
    }
    return
  }
  func.func @transform_0(%arg0: i32, %arg1: i32) -> (i32, i32) {
    %c0_i32 = arith.constant 0 : i32
    %c0_i32_0 = arith.constant 0 : i32
    return %arg0, %c0_i32 : i32, i32
  }
  func.func @transform_1(%arg0: i32, %arg1: i32) -> (i32, i32) {
    %c0_i32 = arith.constant 0 : i32
    %c0_i32_0 = arith.constant 0 : i32
    return %c0_i32, %arg1 : i32, i32
  }
  func.func @transform_2(%arg0: i32, %arg1: i32) -> (i32, i32) {
    %c0_i32 = arith.constant 0 : i32
    %c0_i32_0 = arith.constant 0 : i32
    return %c0_i32, %arg1 : i32, i32
  }
  func.func @transform_3(%arg0: i32, %arg1: i32) -> (i32, i32) {
    %c0_i32 = arith.constant 0 : i32
    %c0_i32_0 = arith.constant 0 : i32
    return %arg1, %c0_i32 : i32, i32
  }
  func.func @transform_4(%arg0: i32, %arg1: i32) -> (i32, i32) {
    %c0_i32 = arith.constant 0 : i32
    %c0_i32_0 = arith.constant 0 : i32
    %c0_i32_1 = arith.constant 0 : i32
    return %c0_i32, %c0_i32_0 : i32, i32
  }
  func.func @transform_5(%arg0: i32, %arg1: i32) -> (i32, i32) {
    %c0_i32 = arith.constant 0 : i32
    %c0_i32_0 = arith.constant 0 : i32
    return %arg0, %c0_i32 : i32, i32
  }
  func.func @transform_6(%arg0: i32, %arg1: i32) -> (i32, i32) {
    %c0_i32 = arith.constant 0 : i32
    %c0_i32_0 = arith.constant 0 : i32
    %c0_i32_1 = arith.constant 0 : i32
    return %c0_i32, %c0_i32_0 : i32, i32
  }
  func.func @transform_7(%arg0: i32, %arg1: i32) -> (i32, i32) {
    %c0_i32 = arith.constant 0 : i32
    %c0_i32_0 = arith.constant 0 : i32
    %c0_i32_1 = arith.constant 0 : i32
    return %c0_i32, %c0_i32_0 : i32, i32
  }
  func.func @transform_8(%arg0: i32, %arg1: i32) -> (i32, i32) {
    %c0_i32 = arith.constant 0 : i32
    %c0_i32_0 = arith.constant 0 : i32
    return %arg0, %c0_i32 : i32, i32
  }
}

module attributes {stable_mosaic.version = 11 : i64} {
  func.func @_pool_normalize_kernel(%arg0: i32, %arg1: memref<1x8x32xf32, #tpu.memory_space<vmem>>, %arg2: memref<1x8x1xf32, #tpu.memory_space<vmem>>, %arg3: memref<1x1x32xf32, #tpu.memory_space<vmem>>) attributes {dimension_semantics = [#tpu.dimension_semantics<parallel>], iteration_bounds = array<i64: 2>, scalar_prefetch = 0 : i64, scratch_operands = 0 : i64, tpu.core_type = #tpu.core_type<tc>, window_params = [{transform_indices = @transform_0, window_bounds = array<i64: 1, 8, 32>}, {transform_indices = @transform_1, window_bounds = array<i64: 1, 8, 1>}, {transform_indices = @transform_2, window_bounds = array<i64: 1, 1, 32>}]} {
    %c0 = arith.constant 0 : index
    %c0_0 = arith.constant 0 : index
    %c0_1 = arith.constant 0 : index
    %0 = vector.load %arg1[%c0, %c0_0, %c0_1] : memref<1x8x32xf32, #tpu.memory_space<vmem>>, vector<1x8x32xf32>
    %1 = vector.shape_cast %0 : vector<1x8x32xf32> to vector<8x32xf32>
    %c0_2 = arith.constant 0 : index
    %c0_3 = arith.constant 0 : index
    %c0_4 = arith.constant 0 : index
    %2 = vector.load %arg2[%c0_2, %c0_3, %c0_4] : memref<1x8x1xf32, #tpu.memory_space<vmem>>, vector<1x8x1xf32>
    %3 = vector.shape_cast %2 : vector<1x8x1xf32> to vector<8x1xf32>
    %4 = vector.broadcast %3 : vector<8x1xf32> to vector<8x32xf32>
    %5 = arith.mulf %1, %4 : vector<8x32xf32>
    %cst = arith.constant dense<0.000000e+00> : vector<32xf32>
    %6 = vector.multi_reduction <add>, %5, %cst [0] : vector<8x32xf32> to vector<32xf32>
    %7 = vector.shape_cast %6 : vector<32xf32> to vector<1x32xf32>
    %8 = vector.shape_cast %3 : vector<8x1xf32> to vector<1x8x1xf32>
    %cst_5 = arith.constant dense<0.000000e+00> : vector<1xf32>
    %9 = vector.multi_reduction <add>, %8, %cst_5 [1, 2] : vector<1x8x1xf32> to vector<1xf32>
    %10 = vector.shape_cast %9 : vector<1xf32> to vector<1x1x1xf32>
    %11 = vector.extract %10[0, 0, 0] : f32 from vector<1x1x1xf32>
    %cst_6 = arith.constant 1.000000e+00 : f32
    %12 = arith.maximumf %11, %cst_6 : f32
    %13 = vector.broadcast %12 : f32 to vector<1x32xf32>
    %14 = arith.divf %7, %13 : vector<1x32xf32>
    %15 = arith.mulf %14, %14 : vector<1x32xf32>
    %16 = vector.shape_cast %15 : vector<1x32xf32> to vector<1x1x32xf32>
    %cst_7 = arith.constant dense<0.000000e+00> : vector<1xf32>
    %17 = vector.multi_reduction <add>, %16, %cst_7 [1, 2] : vector<1x1x32xf32> to vector<1xf32>
    %18 = vector.shape_cast %17 : vector<1xf32> to vector<1x1x1xf32>
    %19 = vector.extract %18[0, 0, 0] : f32 from vector<1x1x1xf32>
    %cst_8 = arith.constant 1.000000e-24 : f32
    %20 = arith.maximumf %19, %cst_8 : f32
    %21 = math.rsqrt %20 : f32
    %22 = vector.broadcast %21 : f32 to vector<1x32xf32>
    %23 = arith.mulf %14, %22 : vector<1x32xf32>
    %c0_9 = arith.constant 0 : index
    %c0_10 = arith.constant 0 : index
    %c0_11 = arith.constant 0 : index
    %24 = vector.load %arg3[%c0_9, %c0_10, %c0_11] : memref<1x1x32xf32, #tpu.memory_space<vmem>>, vector<1x1x32xf32>
    %25 = vector.shape_cast %24 : vector<1x1x32xf32> to vector<1x32xf32>
    %26 = vector.shape_cast %23 : vector<1x32xf32> to vector<1x1x32xf32>
    tpu.vector_store %arg3[%c0_9, %c0_10, %c0_11], %26 {strides = array<i32>} : memref<1x1x32xf32, #tpu.memory_space<vmem>>, vector<1x1x32xf32>,
    return
  }
  func.func @transform_0(%arg0: i32) -> (i32, i32, i32) {
    %c0_i32 = arith.constant 0 : i32
    %c0_i32_0 = arith.constant 0 : i32
    %c0_i32_1 = arith.constant 0 : i32
    return %arg0, %c0_i32, %c0_i32_0 : i32, i32, i32
  }
  func.func @transform_1(%arg0: i32) -> (i32, i32, i32) {
    %c0_i32 = arith.constant 0 : i32
    %c0_i32_0 = arith.constant 0 : i32
    %c0_i32_1 = arith.constant 0 : i32
    return %arg0, %c0_i32, %c0_i32_0 : i32, i32, i32
  }
  func.func @transform_2(%arg0: i32) -> (i32, i32, i32) {
    %c0_i32 = arith.constant 0 : i32
    %c0_i32_0 = arith.constant 0 : i32
    %c0_i32_1 = arith.constant 0 : i32
    return %arg0, %c0_i32, %c0_i32_0 : i32, i32, i32
  }
}

</mosaic_0001>

<bundles_post_ra>
// kernel: nomic_embedding_forward.10
= control target key start
LH: loop header
LB: loop body
LE: loop exit
PB: predicated region body
PF: predicated region fallthrough
CT: control target
= control target key end

     0   :  { %8 = vsyncpa [#allocation3], 0  ;;  %s319_s0 = inlined_call_operand.hbm [shape: f32[16,32], index: 0, kind: input, shape index: {}]   ;;  %s320_s1 = inlined_call_operand.hbm [shape: f32[1,32], index: 1, kind: input, shape index: {}]   ;;  %s321_s2 = inlined_call_operand.hbm [shape: f32[1,32], index: 2, kind: input, shape index: {}]   ;;  %s322_s3 = inlined_call_operand.hbm [shape: f32[16,32], index: 3, kind: output, shape index: {}]  }
   0x1   :  { %9 = vsyncpa [#allocation6], 0 }
   0x2   :  { %10 = vsyncpa [#allocation4], 0  ;;  %s226_s12 = smov [#allocation5]   ;;  %s227_s14 = smov [#allocation2]  }
   0x3   :  { %s29_s13 = sshll.u32 %s226_s12, 4  ;;  %s16_s15 = sshll.u32 %s227_s14, 4  ;;  %s30_s13 = int_to_ptr.vmem [resolvable:$true] %s29_s13  ;;  %s252_s15 = int_to_ptr.vmem [resolvable:$true] %s16_s15 }
   0x4   :  { %s132_s18 = scalar_lea.hbm %s320_s1, 16 }
   0x5   :  { %p133_p0 = scmp.ne.s32.totalorder %s320_s1, %s132_s18  ;;  %p136_p1 = scmp.lt.u32.totalorder %s132_s18, %s320_s1 }
   0x7   :  { %p138_p2 = pnand %p136_p1, %p133_p0 }
   0x9   :  { %141 = shalt.err (!%p138_p2)
}
   0xa   :  { %s142_s23 = scalar_lea.vmem %s30_s13, 16  ;;  %s146_s24 = scalar_lea.vmem %s30_s13, 32 }
   0xb   :  { %p143_p3 = scmp.ne.s32.totalorder %s30_s13, %s142_s23  ;;  %p147_p4 = scmp.lt.s32.totalorder %s30_s13, %s30_s13 }
   0xc   :  { %p148_p5 = scmp.lt.s32.totalorder %s146_s24, %s142_s23 }
   0xe   :  { %p149_p6 = por %p148_p5, %p147_p4 }
  0x10   :  { %p150_p7 = pnand %p149_p6, %p143_p3 }
  0x12   :  { %153 = shalt.err (!%p150_p7)
}
  0x13   :  { %32 = dma.hbm_to_vmem [thread:$0]  %s320_s1, 16, %s30_s13, [#allocation6]  }
  0x14   :  { %s154_s29 = scalar_lea.hbm %s319_s0, 256 }
  0x15   :  { %p155_p8 = scmp.ne.s32.totalorder %s319_s0, %s154_s29  ;;  %p158_p9 = scmp.lt.u32.totalorder %s154_s29, %s319_s0 }
  0x17   :  { %p160_p10 = pnand %p158_p9, %p155_p8 }
  0x19   :  { %163 = shalt.err (!%p160_p10)
}
  0x1a   :  { %s164_s7 = scalar_lea.vmem %s252_s15, 256  ;;  %p169_p12 = scmp.lt.s32.totalorder %s252_s15, %s252_s15 }
  0x1b   :  { %p165_p11 = scmp.ne.s32.totalorder %s252_s15, %s164_s7  ;;  %p170_p13 = scmp.lt.s32.totalorder %s164_s7, %s164_s7 }
  0x1d   :  { %p171_p0 = por %p170_p13, %p169_p12 }
  0x1f   :  { %p172_p1 = pnand %p171_p0, %p165_p11 }
  0x21   :  { %175 = shalt.err (!%p172_p1)
}
  0x22   :  { %s228_s1 = smov 128   ;;  %s229_s8 = smov 8  }
  0x23   :  { %22 = dma.hbm_to_vmem [thread:$0]  %s319_s0, 256, %s252_s15, [#allocation3], %s228_s1, %s228_s1, %s229_s8  }
  0x24   :  { %s230_s11 = smov [#allocation7]   ;;  %s176_s16 = scalar_lea.hbm %s321_s2, 16 }
  0x25   :  { %s39_s12 = sshll.u32 %s230_s11, 4  ;;  %p177_p2 = scmp.ne.s32.totalorder %s321_s2, %s176_s16  ;;  %s40_s12 = int_to_ptr.vmem [resolvable:$true] %s39_s12 }
  0x26   :  { %p180_p3 = scmp.lt.u32.totalorder %s176_s16, %s321_s2 }
  0x28   :  { %p182_p4 = pnand %p180_p3, %p177_p2 }
  0x2a   :  { %185 = shalt.err (!%p182_p4)
}
  0x2b   :  { %s186_s21 = scalar_lea.vmem %s40_s12, 16  ;;  %s190_s0 = scalar_lea.vmem %s40_s12, 32 }
  0x2c   :  { %p187_p5 = scmp.ne.s32.totalorder %s40_s12, %s186_s21  ;;  %p191_p6 = scmp.lt.s32.totalorder %s40_s12, %s40_s12 }
  0x2d   :  { %p192_p7 = scmp.lt.s32.totalorder %s190_s0, %s186_s21 }
  0x2f   :  { %p193_p8 = por %p192_p7, %p191_p6 }
  0x31   :  { %p194_p9 = pnand %p193_p8, %p187_p5 }
  0x33   :  { %197 = shalt.err (!%p194_p9)
}
  0x34   :  { %42 = dma.hbm_to_vmem [thread:$0]  %s321_s2, 16, %s40_s12, [#allocation6]  }
  0x35   :  { %220 = dma.done.wait [#allocation3], 256  }
  0x36   :  { %221 = vsyncadd [#allocation3], 4294967040 }
  0x37   :  { %222 = dma.done.wait [#allocation6], 32  }
  0x38   :  { %223 = vsyncadd [#allocation6], 4294967264  ;;  %vm54_vm0 = vcmask 261120   ;;  %v52_v0 = vld [vmem:[#allocation2] sm:$0xff]  ;;  %v53_v1 = vld [vmem:[#allocation2 + $0x8] sm:$0xff]  ;;  %s231_s2 = smov [#allocation8]  }
  0x39   :  { %v55_v2 = vsel %vm54_vm0, %v52_v0, 0.0  ;;  %v58_v3 = vsel %vm54_vm0, %v53_v1, 0.0  ;;  %v120_v21 = vld [vmem:[#allocation5] ss:$0 sm:$0xff]  ;;  %v121_v23 = vld [vmem:[#allocation7] ss:$0 sm:$0xff] }
  0x3a   :  { %56 = vadd.xlane.f32.xlu0 %v55_v2  ;;  %s107_s23 = sshll.u32 %s231_s2, 4  ;;  %s108_s23 = int_to_ptr.vmem [resolvable:$true] %s107_s23 }
  0x3b   :  { %s198_s24 = scalar_lea.vmem %s108_s23, 256  ;;  %p203_p11 = scmp.lt.s32.totalorder %s108_s23, %s108_s23 }
  0x3c   :  { %p199_p10 = scmp.ne.s32.totalorder %s108_s23, %s198_s24  ;;  %p204_p12 = scmp.lt.s32.totalorder %s198_s24, %s198_s24 }
  0x3e   :  { %59 = vadd.xlane.f32.xlu0 %v58_v3  ;;  %p205_p13 = por %p204_p12, %p203_p11 }
  0x40   :  { %p206_p0 = pnand %p205_p13, %p199_p10 }
  0xc7   :  { %v57_v4 = vpop.xlane.xlu0 %56 }
  0xc8   :  { %v62_v5 = vmul.f32 0.03125, %v57_v4 }
  0xca   :  { %v64_v6 = vsub.f32 %v52_v0, %v62_v5 }
  0xcb   :  { %v60_v7 = vpop.xlane.xlu0 %59 }
  0xcc   :  { %v63_v8 = vmul.f32 0.03125, %v60_v7  ;;  %v66_v9 = vmul.f32 %v64_v6, %v64_v6 }
  0xce   :  { %v65_v10 = vsub.f32 %v53_v1, %v63_v8  ;;  %v68_v11 = vsel %vm54_vm0, %v66_v9, 0.0 }
  0xcf   :  { %69 = vadd.xlane.f32.xlu1 %v68_v11 }
  0xd0   :  { %v67_v12 = vmul.f32 %v65_v10, %v65_v10 }
  0xd2   :  { %v71_v13 = vsel %vm54_vm0, %v67_v12, 0.0 }
  0xd3   :  { %72 = vadd.xlane.f32.xlu1 %v71_v13 }
 0x15c   :  { %v70_v14 = vpop.xlane.xlu1 %69 }
 0x15d   :  { %v74_v15 = vmul.f32 0.03125, %v70_v14 }
 0x15f   :  { %v76_v16 = vadd.f32 1e-12, %v74_v15 }
 0x160   :  { %v73_v17 = vpop.xlane.xlu1 %72 }
 0x161   :  { %128 = vrsqrt.f32 %v76_v16  ;;  %v75_v18 = vmul.f32 0.03125, %v73_v17 }
 0x163   :  { %v77_v19 = vadd.f32 1e-12, %v75_v18 }
 0x165   :  { %130 = vrsqrt.f32 %v77_v19 }
 0x16b   :  { %v129_v20 = vpop.eup %128 }
 0x16c   :  { %v80_v22 = vmul.f32 %v129_v20, %v64_v6 }
 0x16e   :  { %v89_v24 = vmul.f32 %v120_v21, %v80_v22 }
 0x16f   :  { %v131_v25 = vpop.eup %130 }
 0x170   :  { %v81_v26 = vmul.f32 %v131_v25, %v65_v10  ;;  %v98_v27 = vadd.f32 %v121_v23, %v89_v24 }
 0x172   :  { %v90_v28 = vmul.f32 %v120_v21, %v81_v26  ;;  %100 = vst.msk [vmem:[#allocation8] sm:$0xff] %vm54_vm0, %v98_v27 }
 0x174   :  { %v99_v29 = vadd.f32 %v121_v23, %v90_v28 }
 0x176   :  { %101 = vst.msk [vmem:[#allocation8 + $0x8] sm:$0xff] %vm54_vm0, %v99_v29 }
 0x177   :  { %209 = shalt.err (!%p206_p0)
}
 0x178   :  { %s210_s27 = scalar_lea.hbm %s322_s3, 256 }
 0x179   :  { %p211_p1 = scmp.ne.s32.totalorder %s322_s3, %s210_s27  ;;  %p214_p2 = scmp.lt.u32.totalorder %s210_s27, %s322_s3 }
 0x17b   :  { %p216_p3 = pnand %p214_p2, %p211_p1 }
 0x17d   :  { %219 = shalt.err (!%p216_p3)
}
 0x17e   :  { %113 = dma.vmem_to_hbm [thread:$0]  %s108_s23, 256, %s322_s3, [#allocation4], %s228_s1, %s228_s1, %s229_s8  }
 0x17f   :  { %224 = dma.done.wait [#allocation4], 256  }
 0x180   :  { %225 = vsyncadd [#allocation4], 4294967040 }
 0x181   :  { %117 = vsyncpa [#allocation3], 1 }
 0x182   :  { %118 = vsyncpa [#allocation6], 1 }
 0x183   :  { %119 = vsyncpa [#allocation4], 1 }

// kernel: nomic_embedding_forward.13
= control target key start
LH: loop header
LB: loop body
LE: loop exit
PB: predicated region body
PF: predicated region fallthrough
CT: control target
= control target key end

     0   :  { %11 = vsyncpa [#allocation3], 0  ;;  %s607_s0 = inlined_call_operand.hbm [shape: bf16[16,32], index: 0, kind: input, shape index: {}]   ;;  %s608_s1 = inlined_call_operand.hbm [shape: bf16[32,32], index: 1, kind: input, shape index: {}]   ;;  %s609_s2 = inlined_call_operand.hbm [shape: f32[1,32], index: 2, kind: input, shape index: {}]   ;;  %s610_s3 = inlined_call_operand.hbm [shape: f32[16,32], index: 3, kind: input, shape index: {}]   ;;  %s611_s4 = inlined_call_operand.hbm [shape: f32[1,32], index: 4, kind: input, shape index: {}]   ;;  %s612_s5 = inlined_call_operand.hbm [shape: f32[1,32], index: 5, kind: input, shape index: {}]   ;;  %s613_s6 = inlined_call_operand.hbm [shape: f32[16,32], index: 6, kind: output, shape index: {}]  }
   0x1   :  { %12 = vsyncpa [#allocation6], 0 }
   0x2   :  { %13 = vsyncpa [#allocation9], 0 }
   0x3   :  { %14 = vsyncpa [#allocation12], 0 }
   0x4   :  { %15 = vsyncpa [#allocation4], 0  ;;  %s449_s21 = smov [#allocation5]   ;;  %s450_s23 = smov [#allocation8]  }
   0x5   :  { %s33_s22 = sshll.u32 %s449_s21, 4  ;;  %s55_s24 = sshll.u32 %s450_s23, 4  ;;  %s34_s22 = int_to_ptr.vmem [resolvable:$true] %s33_s22  ;;  %s497_s24 = int_to_ptr.vmem [resolvable:$true] %s55_s24 }
   0x6   :  { %s285_s27 = scalar_lea.hbm %s608_s1, 256 }
   0x7   :  { %p286_p0 = scmp.ne.s32.totalorder %s608_s1, %s285_s27  ;;  %p289_p1 = scmp.lt.u32.totalorder %s285_s27, %s608_s1 }
   0x9   :  { %p291_p2 = pnand %p289_p1, %p286_p0 }
   0xb   :  { %294 = shalt.err (!%p291_p2)
}
   0xc   :  { %s295_s8 = scalar_lea.vmem %s34_s22, 256  ;;  %p300_p4 = scmp.lt.s32.totalorder %s34_s22, %s34_s22 }
   0xd   :  { %p296_p3 = scmp.ne.s32.totalorder %s34_s22, %s295_s8  ;;  %p301_p5 = scmp.lt.s32.totalorder %s295_s8, %s295_s8 }
   0xf   :  { %p302_p6 = por %p301_p5, %p300_p4 }
  0x11   :  { %p303_p7 = pnand %p302_p6, %p296_p3 }
  0x13   :  { %306 = shalt.err (!%p303_p7)
}
  0x14   :  { %s451_s9 = smov 64   ;;  %s452_s10 = smov 4  }
  0x15   :  { %39 = dma.hbm_to_vmem [thread:$0]  %s608_s1, 256, %s34_s22, [#allocation6], %s451_s9, %s451_s9, %s452_s10  }
  0x16   :  { %s307_s15 = scalar_lea.hbm %s610_s3, 256 }
  0x17   :  { %p308_p8 = scmp.ne.s32.totalorder %s610_s3, %s307_s15  ;;  %p311_p9 = scmp.lt.u32.totalorder %s307_s15, %s610_s3 }
  0x19   :  { %p313_p10 = pnand %p311_p9, %p308_p8 }
  0x1b   :  { %316 = shalt.err (!%p313_p10)
}
  0x1c   :  { %s317_s20 = scalar_lea.vmem %s497_s24, 256  ;;  %p322_p12 = scmp.lt.s32.totalorder %s497_s24, %s497_s24 }
  0x1d   :  { %p318_p11 = scmp.ne.s32.totalorder %s497_s24, %s317_s20  ;;  %p323_p13 = scmp.lt.s32.totalorder %s317_s20, %s317_s20 }
  0x1f   :  { %p324_p0 = por %p323_p13, %p322_p12 }
  0x21   :  { %p325_p1 = pnand %p324_p0, %p318_p11 }
  0x23   :  { %328 = shalt.err (!%p325_p1)
}
  0x24   :  { %s453_s1 = smov 128   ;;  %s454_s21 = smov 8  }
  0x25   :  { %61 = dma.hbm_to_vmem [thread:$0]  %s610_s3, 256, %s497_s24, [#allocation9], %s453_s1, %s453_s1, %s454_s21  }
  0x26   :  { %s455_s25 = smov [#allocation2]   ;;  %s456_s27 = smov [#allocation7]  }
  0x27   :  { %s21_s26 = sshll.u32 %s455_s25, 4  ;;  %s46_s28 = sshll.u32 %s456_s27, 4  ;;  %s22_s26 = int_to_ptr.vmem [resolvable:$true] %s21_s26  ;;  %s47_s28 = int_to_ptr.vmem [resolvable:$true] %s46_s28 }
  0x28   :  { %s329_s7 = scalar_lea.hbm %s607_s0, 128 }
  0x29   :  { %p330_p2 = scmp.ne.s32.totalorder %s607_s0, %s329_s7  ;;  %p333_p3 = scmp.lt.u32.totalorder %s329_s7, %s607_s0 }
  0x2b   :  { %p335_p4 = pnand %p333_p3, %p330_p2 }
  0x2d   :  { %338 = shalt.err (!%p335_p4)
}
  0x2e   :  { %s339_s3 = scalar_lea.vmem %s22_s26, 128  ;;  %p344_p6 = scmp.lt.s32.totalorder %s22_s26, %s22_s26 }
  0x2f   :  { %p340_p5 = scmp.ne.s32.totalorder %s22_s26, %s339_s3  ;;  %p345_p7 = scmp.lt.s32.totalorder %s339_s3, %s339_s3 }
  0x31   :  { %p346_p8 = por %p345_p7, %p344_p6 }
  0x33   :  { %p347_p9 = pnand %p346_p8, %p340_p5 }
  0x35   :  { %350 = shalt.err (!%p347_p9)
}
  0x36   :  { %27 = dma.hbm_to_vmem [thread:$0]  %s607_s0, 128, %s22_s26, [#allocation3], %s451_s9, %s451_s9, %s452_s10  }
  0x37   :  { %s351_s17 = scalar_lea.hbm %s609_s2, 16 }
  0x38   :  { %p352_p10 = scmp.ne.s32.totalorder %s609_s2, %s351_s17  ;;  %p355_p11 = scmp.lt.u32.totalorder %s351_s17, %s609_s2 }
  0x3a   :  { %p357_p12 = pnand %p355_p11, %p352_p10 }
  0x3c   :  { %360 = shalt.err (!%p357_p12)
}
  0x3d   :  { %s361_s23 = scalar_lea.vmem %s47_s28, 16  ;;  %s365_s25 = scalar_lea.vmem %s47_s28, 32 }
  0x3e   :  { %p362_p13 = scmp.ne.s32.totalorder %s47_s28, %s361_s23  ;;  %p366_p0 = scmp.lt.s32.totalorder %s47_s28, %s47_s28 }
  0x3f   :  { %p367_p1 = scmp.lt.s32.totalorder %s365_s25, %s361_s23 }
  0x41   :  { %p368_p2 = por %p367_p1, %p366_p0 }
  0x43   :  { %p369_p3 = pnand %p368_p2, %p362_p13 }
  0x45   :  { %372 = shalt.err (!%p369_p3)
}
  0x46   :  { %49 = dma.hbm_to_vmem [thread:$0]  %s609_s2, 16, %s47_s28, [#allocation6]  }
  0x47   :  { %s457_s10 = smov [#allocation10]   ;;  %s458_s27 = smov [#allocation11]  }
  0x48   :  { %s68_s26 = sshll.u32 %s457_s10, 4  ;;  %s78_s29 = sshll.u32 %s458_s27, 4  ;;  %s69_s26 = int_to_ptr.vmem [resolvable:$true] %s68_s26  ;;  %s79_s29 = int_to_ptr.vmem [resolvable:$true] %s78_s29 }
  0x49   :  { %s373_s8 = scalar_lea.hbm %s611_s4, 16 }
  0x4a   :  { %p374_p4 = scmp.ne.s32.totalorder %s611_s4, %s373_s8  ;;  %p377_p5 = scmp.lt.u32.totalorder %s373_s8, %s611_s4 }
  0x4c   :  { %p379_p6 = pnand %p377_p5, %p374_p4 }
  0x4e   :  { %382 = shalt.err (!%p379_p6)
}
  0x4f   :  { %s383_s2 = scalar_lea.vmem %s69_s26, 16  ;;  %s387_s28 = scalar_lea.vmem %s69_s26, 32 }
  0x50   :  { %p384_p7 = scmp.ne.s32.totalorder %s69_s26, %s383_s2  ;;  %p388_p8 = scmp.lt.s32.totalorder %s69_s26, %s69_s26 }
  0x51   :  { %p389_p9 = scmp.lt.s32.totalorder %s387_s28, %s383_s2 }
  0x53   :  { %p390_p10 = por %p389_p9, %p388_p8 }
  0x55   :  { %p391_p11 = pnand %p390_p10, %p384_p7 }
  0x57   :  { %394 = shalt.err (!%p391_p11)
}
  0x58   :  { %71 = dma.hbm_to_vmem [thread:$0]  %s611_s4, 16, %s69_s26, [#allocation9]  }
  0x59   :  { %s395_s17 = scalar_lea.hbm %s612_s5, 16 }
  0x5a   :  { %p396_p12 = scmp.ne.s32.totalorder %s612_s5, %s395_s17  ;;  %p399_p13 = scmp.lt.u32.totalorder %s395_s17, %s612_s5 }
  0x5c   :  { %p401_p0 = pnand %p399_p13, %p396_p12 }
  0x5e   :  { %404 = shalt.err (!%p401_p0)
}
  0x5f   :  { %s405_s23 = scalar_lea.vmem %s79_s29, 16  ;;  %s409_s25 = scalar_lea.vmem %s79_s29, 32 }
  0x60   :  { %p406_p1 = scmp.ne.s32.totalorder %s79_s29, %s405_s23  ;;  %p410_p2 = scmp.lt.s32.totalorder %s79_s29, %s79_s29 }
  0x61   :  { %p411_p3 = scmp.lt.s32.totalorder %s409_s25, %s405_s23 }
  0x63   :  { %p412_p4 = por %p411_p3, %p410_p2 }
  0x65   :  { %p413_p5 = pnand %p412_p4, %p406_p1 }
  0x67   :  { %416 = shalt.err (!%p413_p5)
}
  0x68   :  { %81 = dma.hbm_to_vmem [thread:$0]  %s612_s5, 16, %s79_s29, [#allocation12]  }
  0x69   :  { %439 = dma.done.wait [#allocation3], 128  }
  0x6a   :  { %440 = vsyncadd [#allocation3], 4294967168 }
  0x6b   :  { %441 = dma.done.wait [#allocation6], 272  }
  0x6c   :  { %442 = vsyncadd [#allocation6], 4294967024 }
  0x6d   :  { %443 = dma.done.wait [#allocation9], 272  }
  0x6e   :  { %444 = vsyncadd [#allocation9], 4294967024 }
  0x6f   :  { %445 = dma.done.wait [#allocation12], 16  }
  0x70   :  { %446 = vsyncadd [#allocation12], 4294967280  ;;  %v459_v0 = vmov 0.0   ;;  %vm460_vm0 = vmmov 0   ;;  %v278_v1 = vld [vmem:[#allocation5] sm:$0xff]   ;;  %v279_v2 = vld [vmem:[#allocation5 + $0x8] sm:$0xff]  }
  0x71   :  { %257 = vmatprep.subr.bf16.mxu0 %v459_v0  ;;  %261 = vmatprep.mubr.msk.bf16.mxu0 %vm460_vm0, %v459_v0  ;;  %v280_v3 = vld [vmem:[#allocation2] sm:$0xff]   ;;  %vm131_vm1 = vcmask 261120   ;;  %v247_v4 = vld [vmem:[#allocation7] ss:$0 sm:$0xff]  ;;  %v252_v34 = vld [vmem:[#allocation10] ss:$0 sm:$0xff] }
  0x72   :  { %258 = vmatpush3.bf16.msra.mxu0 %v278_v1  ;;  %v176_v6 = vld [vmem:[#allocation8] sm:$0xff]  ;;  %v177_v10 = vld [vmem:[#allocation8 + $0x8] sm:$0xff]  ;;  %v253_v36 = vld [vmem:[#allocation11] ss:$0 sm:$0xff]  ;;  %s461_s5 = smov [#allocation13]  }
  0x73   :  { %259 = vmatprep.subr.bf16.mxu0 %v459_v0  ;;  %s232_s9 = sshll.u32 %s461_s5, 4  ;;  %s233_s9 = int_to_ptr.vmem [resolvable:$true] %s232_s9 }
  0x74   :  { %s417_s10 = scalar_lea.vmem %s233_s9, 256  ;;  %p422_p7 = scmp.lt.s32.totalorder %s233_s9, %s233_s9 }
  0x75   :  { %p418_p6 = scmp.ne.s32.totalorder %s233_s9, %s417_s10  ;;  %p423_p8 = scmp.lt.s32.totalorder %s417_s10, %s417_s10 }
  0x76   :  { %260 = vmatpush3.bf16.msra.mxu0 %v279_v2 }
  0x77   :  { %p424_p9 = por %p423_p8, %p422_p7 }
  0x79   :  { %262 = vmatmul.mubr.msk.bf16.vlgmr.msra.gmra.mrb[0].mxu0 %vm131_vm1, %v280_v3  ;;  %p425_p10 = pnand %p424_p9, %p418_p6 }
 0x14c   :  { %v169_v5 = vpop.f32.mrb[0].mxu0 }
 0x14d   :  { %v170_v7 = vadd.f32 %v247_v4, %v169_v5  ;;  %v263_v8 = vpop.f32.mrb[1].mxu0 }
 0x14e   :  { %v172_v9 = vpop.f32.mrb[2].mxu0 }
 0x14f   :  { %v173_v11 = vadd.f32 %v247_v4, %v172_v9  ;;  %v264_v12 = vpop.f32.mrb[3].mxu0  ;;  %v178_v13 = vadd.f32 %v176_v6, %v170_v7 }
 0x151   :  { %v180_v14 = vsel %vm131_vm1, %v178_v13, 0.0  ;;  %v179_v15 = vadd.f32 %v177_v10, %v173_v11 }
 0x152   :  { %181 = vadd.xlane.f32.xlu0 %v180_v14 }
 0x153   :  { %v183_v16 = vsel %vm131_vm1, %v179_v15, 0.0 }
 0x156   :  { %184 = vadd.xlane.f32.xlu0 %v183_v16 }
 0x1df   :  { %v182_v17 = vpop.xlane.xlu0 %181 }
 0x1e0   :  { %v187_v18 = vmul.f32 0.03125, %v182_v17 }
 0x1e2   :  { %v189_v19 = vsub.f32 %v178_v13, %v187_v18 }
 0x1e3   :  { %v185_v20 = vpop.xlane.xlu0 %184 }
 0x1e4   :  { %v188_v21 = vmul.f32 0.03125, %v185_v20  ;;  %v191_v22 = vmul.f32 %v189_v19, %v189_v19 }
 0x1e6   :  { %v190_v23 = vsub.f32 %v179_v15, %v188_v21  ;;  %v193_v24 = vsel %vm131_vm1, %v191_v22, 0.0 }
 0x1e7   :  { %194 = vadd.xlane.f32.xlu1 %v193_v24 }
 0x1e8   :  { %v192_v25 = vmul.f32 %v190_v23, %v190_v23 }
 0x1ea   :  { %v196_v26 = vsel %vm131_vm1, %v192_v25, 0.0 }
 0x1eb   :  { %197 = vadd.xlane.f32.xlu1 %v196_v26 }
 0x274   :  { %v195_v27 = vpop.xlane.xlu1 %194 }
 0x275   :  { %v199_v28 = vmul.f32 0.03125, %v195_v27 }
 0x277   :  { %v201_v29 = vadd.f32 1e-12, %v199_v28 }
 0x278   :  { %v198_v30 = vpop.xlane.xlu1 %197 }
 0x279   :  { %281 = vrsqrt.f32 %v201_v29  ;;  %v200_v31 = vmul.f32 0.03125, %v198_v30 }
 0x27b   :  { %v202_v32 = vadd.f32 1e-12, %v200_v31 }
 0x27d   :  { %283 = vrsqrt.f32 %v202_v32 }
 0x283   :  { %v282_v33 = vpop.eup %281 }
 0x284   :  { %v205_v35 = vmul.f32 %v282_v33, %v189_v19 }
 0x286   :  { %v214_v37 = vmul.f32 %v252_v34, %v205_v35 }
 0x287   :  { %v284_v38 = vpop.eup %283 }
 0x288   :  { %v206_v39 = vmul.f32 %v284_v38, %v190_v23  ;;  %v223_v40 = vadd.f32 %v253_v36, %v214_v37 }
 0x28a   :  { %v215_v41 = vmul.f32 %v252_v34, %v206_v39  ;;  %225 = vst.msk [vmem:[#allocation13] sm:$0xff] %vm131_vm1, %v223_v40 }
 0x28c   :  { %v224_v42 = vadd.f32 %v253_v36, %v215_v41 }
 0x28e   :  { %226 = vst.msk [vmem:[#allocation13 + $0x8] sm:$0xff] %vm131_vm1, %v224_v42 }
 0x28f   :  { %428 = shalt.err (!%p425_p10)
}
 0x290   :  { %s429_s29 = scalar_lea.hbm %s613_s6, 256 }
 0x291   :  { %p430_p11 = scmp.ne.s32.totalorder %s613_s6, %s429_s29  ;;  %p433_p12 = scmp.lt.u32.totalorder %s429_s29, %s613_s6 }
 0x293   :  { %p435_p13 = pnand %p433_p12, %p430_p11 }
 0x295   :  { %438 = shalt.err (!%p435_p13)
}
 0x296   :  { %238 = dma.vmem_to_hbm [thread:$0]  %s233_s9, 256, %s613_s6, [#allocation4], %s453_s1, %s453_s1, %s454_s21  }
 0x297   :  { %447 = dma.done.wait [#allocation4], 256  }
 0x298   :  { %448 = vsyncadd [#allocation4], 4294967040 }
 0x299   :  { %242 = vsyncpa [#allocation3], 1 }
 0x29a   :  { %243 = vsyncpa [#allocation6], 1 }
 0x29b   :  { %244 = vsyncpa [#allocation9], 1 }
 0x29c   :  { %245 = vsyncpa [#allocation12], 1 }
 0x29d   :  { %246 = vsyncpa [#allocation4], 1 }

// kernel: nomic_embedding_forward.11
= control target key start
LH: loop header
LB: loop body
LE: loop exit
PB: predicated region body
PF: predicated region fallthrough
CT: control target
= control target key end

     0   :  { %11 = vsyncpa [#allocation3], 0  ;;  %s534_s0 = inlined_call_operand.hbm [shape: f32[16,32], index: 0, kind: input, shape index: {}]   ;;  %s535_s1 = inlined_call_operand.hbm [shape: bf16[32,96], index: 1, kind: input, shape index: {}]   ;;  %s536_s2 = inlined_call_operand.hbm [shape: f32[1,96], index: 2, kind: input, shape index: {}]   ;;  %s537_s3 = inlined_call_operand.hbm [shape: bf16[16,32], index: 3, kind: output, shape index: {0}]   ;;  %s538_s4 = inlined_call_operand.hbm [shape: bf16[16,32], index: 4, kind: output, shape index: {1}]   ;;  %s539_s5 = inlined_call_operand.hbm [shape: bf16[16,32], index: 5, kind: output, shape index: {2}]  }
   0x1   :  { %12 = vsyncpa [#allocation6], 0 }
   0x2   :  { %13 = vsyncpa [#allocation4], 0 }
   0x3   :  { %14 = vsyncpa [#allocation10], 0  ;;  %s392_s18 = smov [#allocation5]   ;;  %s252_s22 = scalar_lea.hbm %s535_s1, 256 }
   0x4   :  { %s32_s19 = sshll.u32 %s392_s18, 4  ;;  %p253_p0 = scmp.ne.s32.totalorder %s535_s1, %s252_s22  ;;  %s33_s19 = int_to_ptr.vmem [resolvable:$true] %s32_s19 }
   0x5   :  { %p256_p1 = scmp.lt.u32.totalorder %s252_s22, %s535_s1 }
   0x7   :  { %p258_p2 = pnand %p256_p1, %p253_p0 }
   0x9   :  { %261 = shalt.err (!%p258_p2)
}
   0xa   :  { %s262_s27 = scalar_lea.vmem %s33_s19, 256  ;;  %p267_p4 = scmp.lt.s32.totalorder %s33_s19, %s33_s19 }
   0xb   :  { %p263_p3 = scmp.ne.s32.totalorder %s33_s19, %s262_s27  ;;  %p268_p5 = scmp.lt.s32.totalorder %s262_s27, %s262_s27 }
   0xd   :  { %p269_p6 = por %p268_p5, %p267_p4 }
   0xf   :  { %p270_p7 = pnand %p269_p6, %p263_p3 }
  0x11   :  { %273 = shalt.err (!%p270_p7)
}
  0x12   :  { %s393_s28 = smov 64   ;;  %s394_s29 = smov 4  }
  0x13   :  { %38 = dma.hbm_to_vmem [thread:$0]  %s535_s1, 256, %s33_s19, [#allocation6], %s393_s28, %s393_s28, %s394_s29  }
  0x14   :  { %s395_s7 = smov [#allocation2]   ;;  %s274_s11 = scalar_lea.hbm %s534_s0, 256 }
  0x15   :  { %s20_s8 = sshll.u32 %s395_s7, 4  ;;  %p275_p8 = scmp.ne.s32.totalorder %s534_s0, %s274_s11  ;;  %s21_s8 = int_to_ptr.vmem [resolvable:$true] %s20_s8 }
  0x16   :  { %p278_p9 = scmp.lt.u32.totalorder %s274_s11, %s534_s0 }
  0x18   :  { %p280_p10 = pnand %p278_p9, %p275_p8 }
  0x1a   :  { %283 = shalt.err (!%p280_p10)
}
  0x1b   :  { %s284_s16 = scalar_lea.vmem %s21_s8, 256  ;;  %p289_p12 = scmp.lt.s32.totalorder %s21_s8, %s21_s8 }
  0x1c   :  { %p285_p11 = scmp.ne.s32.totalorder %s21_s8, %s284_s16  ;;  %p290_p13 = scmp.lt.s32.totalorder %s284_s16, %s284_s16 }
  0x1e   :  { %p291_p0 = por %p290_p13, %p289_p12 }
  0x20   :  { %p292_p1 = pnand %p291_p0, %p285_p11 }
  0x22   :  { %295 = shalt.err (!%p292_p1)
}
  0x23   :  { %s396_s1 = smov 128   ;;  %s397_s17 = smov 8  }
  0x24   :  { %26 = dma.hbm_to_vmem [thread:$0]  %s534_s0, 256, %s21_s8, [#allocation3], %s396_s1, %s396_s1, %s397_s17  }
  0x25   :  { %s398_s20 = smov [#allocation7]   ;;  %s296_s24 = scalar_lea.hbm %s536_s2, 16 }
  0x26   :  { %s45_s21 = sshll.u32 %s398_s20, 4  ;;  %p297_p2 = scmp.ne.s32.totalorder %s536_s2, %s296_s24  ;;  %s46_s21 = int_to_ptr.vmem [resolvable:$true] %s45_s21 }
  0x27   :  { %p300_p3 = scmp.lt.u32.totalorder %s296_s24, %s536_s2 }
  0x29   :  { %p302_p4 = pnand %p300_p3, %p297_p2 }
  0x2b   :  { %305 = shalt.err (!%p302_p4)
}
  0x2c   :  { %s306_s6 = scalar_lea.vmem %s46_s21, 16  ;;  %s310_s0 = scalar_lea.vmem %s46_s21, 32 }
  0x2d   :  { %p307_p5 = scmp.ne.s32.totalorder %s46_s21, %s306_s6  ;;  %p311_p6 = scmp.lt.s32.totalorder %s46_s21, %s46_s21 }
  0x2e   :  { %p312_p7 = scmp.lt.s32.totalorder %s310_s0, %s306_s6 }
  0x30   :  { %p313_p8 = por %p312_p7, %p311_p6 }
  0x32   :  { %p314_p9 = pnand %p313_p8, %p307_p5 }
  0x34   :  { %317 = shalt.err (!%p314_p9)
}
  0x35   :  { %48 = dma.hbm_to_vmem [thread:$0]  %s536_s2, 16, %s46_s21, [#allocation6]  }
  0x36   :  { %384 = dma.done.wait [#allocation3], 256  }
  0x37   :  { %385 = vsyncadd [#allocation3], 4294967040 }
  0x38   :  { %386 = dma.done.wait [#allocation6], 272  }
  0x39   :  { %387 = vsyncadd [#allocation6], 4294967024  ;;  %v399_v0 = vmov 0.0   ;;  %vm400_vm0 = vmmov 0   ;;  %v250_v1 = vld [vmem:[#allocation5] sm:$0xff]   ;;  %v251_v2 = vld [vmem:[#allocation5 + $0x8] sm:$0xff]  }
  0x3a   :  { %229 = vmatprep.subr.bf16.mxu0 %v399_v0  ;;  %233 = vmatprep.mubr.msk.bf16.mxu0 %vm400_vm0, %v399_v0  ;;  %v59_v3 = vld [vmem:[#allocation2] sm:$0xff]  ;;  %v60_v4 = vld [vmem:[#allocation2 + $0x8] sm:$0xff]  ;;  %vm85_vm1 = vcmask 261120   ;;  %vm140_vm2 = vcmask 257024   ;;  %s401_s2 = smov [#allocation8]   ;;  %s402_s10 = smov 96  }
  0x3b   :  { %230 = vmatpush3.bf16.msra.mxu0 %v250_v1  ;;  %v61_v5 = vpack.c.bf16 %v60_v4, %v59_v3  ;;  %v214_v6 = vld [vmem:[#allocation7] ss:$0 sm:$0xff]  ;;  %s170_s9 = sshll.u32 %s401_s2, 4  ;;  %s171_s9 = int_to_ptr.vmem [resolvable:$true] %s170_s9 }
  0x3c   :  { %231 = vmatprep.subr.bf16.mxu0 %v399_v0  ;;  %s318_s11 = scalar_lea.vmem %s171_s9, 128  ;;  %p323_p11 = scmp.lt.s32.totalorder %s171_s9, %s171_s9 }
  0x3d   :  { %p319_p10 = scmp.ne.s32.totalorder %s171_s9, %s318_s11  ;;  %p324_p12 = scmp.lt.s32.totalorder %s318_s11, %s318_s11 }
  0x3f   :  { %232 = vmatpush3.bf16.msra.mxu0 %v251_v2  ;;  %p325_p13 = por %p324_p12, %p323_p11 }
  0x41   :  { %p326_p0 = pnand %p325_p13, %p319_p10 }
  0x42   :  { %234 = vmatmul.mubr.msk.bf16.vlgmr.msra.gmra.mrb[0].mxu0 %vm85_vm1, %v61_v5 }
 0x115   :  { %v123_v7 = vpop.f32.mrb[0].mxu0 }
 0x116   :  { %v124_v8 = vadd.f32 %v214_v6, %v123_v7  ;;  %v235_v9 = vpop.f32.mrb[1].mxu0 }
 0x117   :  { %v126_v10 = vpop.f32.mrb[2].mxu0 }
 0x118   :  { %v130_v11 = vmul.f32 0.25, %v124_v8  ;;  %v127_v12 = vadd.f32 %v214_v6, %v126_v10  ;;  %v236_v13 = vpop.f32.mrb[3].mxu0  ;;  %v224_v14 = vpack.c.bf16 %v124_v8, %v124_v8 }
 0x11a   :  { %v222_v15 = vpack.c.bf16 %v130_v11, %v130_v11  ;;  %v131_v16 = vmul.f32 0.25, %v127_v12  ;;  %157 = vrot.lane.b32.xlu1 %v224_v14, %s393_s28  ;;  %149 = vrot.lane.b32.xlu0 %v224_v14, %s402_s10  ;;  %v225_v18 = vpack.c.bf16 %v127_v12, %v127_v12 }
 0x11c   :  { %v223_v17 = vpack.c.bf16 %v131_v16, %v131_v16  ;;  %141 = vst.msk [vmem:[#allocation8] sm:$0xf] %vm140_vm2, %v222_v15 }
 0x11e   :  { %159 = vrot.lane.b32.xlu1 %v225_v18, %s393_s28  ;;  %151 = vrot.lane.b32.xlu0 %v225_v18, %s402_s10  ;;  %142 = vst.msk [vmem:[#allocation8 + $0x4] sm:$0xf] %vm140_vm2, %v223_v17 }
 0x11f   :  { %329 = shalt.err (!%p326_p0)
}
 0x120   :  { %s330_s14 = scalar_lea.hbm %s537_s3, 128 }
 0x121   :  { %p331_p1 = scmp.ne.s32.totalorder %s537_s3, %s330_s14  ;;  %p334_p2 = scmp.lt.u32.totalorder %s330_s14, %s537_s3 }
 0x123   :  { %p336_p3 = pnand %p334_p2, %p331_p1 }
 0x125   :  { %339 = shalt.err (!%p336_p3)
}
 0x126   :  { %176 = dma.vmem_to_hbm [thread:$0]  %s171_s9, 128, %s537_s3, [#allocation4], %s393_s28, %s393_s28, %s394_s29  }
 0x127   :  { %s403_s20 = smov [#allocation9]   ;;  %s404_s22 = smov [#allocation11]  }
 0x128   :  { %s182_s21 = sshll.u32 %s403_s20, 4  ;;  %s194_s23 = sshll.u32 %s404_s22, 4  ;;  %s183_s21 = int_to_ptr.vmem [resolvable:$true] %s182_s21  ;;  %s495_s23 = int_to_ptr.vmem [resolvable:$true] %s194_s23 }
 0x129   :  { %s340_s3 = scalar_lea.vmem %s183_s21, 128  ;;  %p345_p5 = scmp.lt.s32.totalorder %s183_s21, %s183_s21 }
 0x12a   :  { %p341_p4 = scmp.ne.s32.totalorder %s183_s21, %s340_s3  ;;  %p346_p6 = scmp.lt.s32.totalorder %s340_s3, %s340_s3 }
 0x12c   :  { %p347_p7 = por %p346_p6, %p345_p5 }
 0x12e   :  { %p348_p8 = pnand %p347_p7, %p341_p4 }
 0x18c   :  { %v158_v19 = vpop.permute.xlu1 %157  ;;  %v150_v20 = vpop.permute.xlu0 %149 }
 0x18d   :  { %163 = vst.msk [vmem:[#allocation11] sm:$0xf] %vm140_vm2, %v158_v19  ;;  %155 = vst.msk [vmem:[#allocation9] sm:$0xf] %vm140_vm2, %v150_v20 }
 0x190   :  { %v160_v21 = vpop.permute.xlu1 %159  ;;  %v152_v22 = vpop.permute.xlu0 %151 }
 0x191   :  { %164 = vst.msk [vmem:[#allocation11 + $0x4] sm:$0xf] %vm140_vm2, %v160_v21  ;;  %156 = vst.msk [vmem:[#allocation9 + $0x4] sm:$0xf] %vm140_vm2, %v152_v22 }
 0x192   :  { %351 = shalt.err (!%p348_p8)
}
 0x193   :  { %s352_s26 = scalar_lea.hbm %s538_s4, 128 }
 0x194   :  { %p353_p9 = scmp.ne.s32.totalorder %s538_s4, %s352_s26  ;;  %p356_p10 = scmp.lt.u32.totalorder %s352_s26, %s538_s4 }
 0x196   :  { %p358_p11 = pnand %p356_p10, %p353_p9 }
 0x198   :  { %361 = shalt.err (!%p358_p11)
}
 0x199   :  { %188 = dma.vmem_to_hbm [thread:$0]  %s183_s21, 128, %s538_s4, [#allocation10], %s393_s28, %s393_s28, %s394_s29  }
 0x19a   :  { %s362_s2 = scalar_lea.vmem %s495_s23, 128  ;;  %p367_p13 = scmp.lt.s32.totalorder %s495_s23, %s495_s23 }
 0x19b   :  { %p363_p12 = scmp.ne.s32.totalorder %s495_s23, %s362_s2  ;;  %p368_p0 = scmp.lt.s32.totalorder %s362_s2, %s362_s2 }
 0x19d   :  { %p369_p1 = por %p368_p0, %p367_p13 }
 0x19f   :  { %p370_p2 = pnand %p369_p1, %p363_p12 }
 0x1a1   :  { %373 = shalt.err (!%p370_p2)
}
 0x1a2   :  { %s374_s11 = scalar_lea.hbm %s539_s5, 128 }
 0x1a3   :  { %p375_p3 = scmp.ne.s32.totalorder %s539_s5, %s374_s11  ;;  %p378_p4 = scmp.lt.u32.totalorder %s374_s11, %s539_s5 }
 0x1a5   :  { %p380_p5 = pnand %p378_p4, %p375_p3 }
 0x1a7   :  { %383 = shalt.err (!%p380_p5)
}
 0x1a8   :  { %200 = dma.vmem_to_hbm [thread:$0]  %s495_s23, 128, %s539_s5, [#allocation10], %s393_s28, %s393_s28, %s394_s29  }
 0x1a9   :  { %388 = dma.done.wait [#allocation4], 128  }
 0x1aa   :  { %389 = vsyncadd [#allocation4], 4294967168 }
 0x1ab   :  { %390 = dma.done.wait [#allocation10], 256  }
 0x1ac   :  { %391 = vsyncadd [#allocation10], 4294967040 }
 0x1ad   :  { %210 = vsyncpa [#allocation3], 1 }
 0x1ae   :  { %211 = vsyncpa [#allocation6], 1 }
 0x1af   :  { %212 = vsyncpa [#allocation4], 1 }
 0x1b0   :  { %213 = vsyncpa [#allocation10], 1 }

// kernel: nomic_embedding_forward.12
= control target key start
LH: loop header
LB: loop body
LE: loop exit
PB: predicated region body
PF: predicated region fallthrough
CT: control target
= control target key end

     0   :  { %s1377_s0 = inlined_call_operand.hbm [shape: bf16[2,8,32], index: 0, kind: input, shape index: {}]   ;;  %s1378_s1 = inlined_call_operand.hbm [shape: bf16[2,8,32], index: 1, kind: input, shape index: {}]   ;;  %s1379_s2 = inlined_call_operand.hbm [shape: bf16[2,8,32], index: 2, kind: input, shape index: {}]   ;;  %s1380_s3 = inlined_call_operand.hbm [shape: f32[2,1,8], index: 3, kind: input, shape index: {}]   ;;  %s1381_s4 = inlined_call_operand.hbm [shape: bf16[2,8,32], index: 4, kind: output, shape index: {}]  }
   0x1   :  { %1387 = sst [smem:[#allocation17_spill]] %s1378_s1 }
   0x2   :  { %9 = vsyncpa [#allocation3], 0 }
   0x3   :  { %11 = vsyncpa [#allocation3 + $0x1], 0 }
   0x4   :  { %12 = vsyncpa [#allocation6], 0 }
   0x5   :  { %14 = vsyncpa [#allocation6 + $0x1], 0 }
   0x6   :  { %15 = vsyncpa [#allocation9], 0 }
   0x7   :  { %17 = vsyncpa [#allocation9 + $0x1], 0 }
   0x8   :  { %18 = vsyncpa [#allocation4], 0 }
   0x9   :  { %20 = vsyncpa [#allocation4 + $0x1], 0  ;;  %s1084_s15 = smov 0   ;;  %s1086_s16 = smov 0  }
   0xa   :  { %s1088_s17 = smov 0   ;;  %s1090_s18 = smov 0  }
   0xb LB: > { %1388 = sst [smem:[#allocation15_spill]] %s1044_s17  ;;  %s1105_s19 = sadd.s32 4294967295, %s1048_s18   ;;  %s1048_s18 = sphi %s1090_s18, %s1410_s18   ;;  %s1044_s17 = sphi %s1088_s17, %s1407_s17   ;;  %s1040_s16 = sphi %s1086_s16, %s1409_s16   ;;  %s1036_s15 = sphi %s1084_s15, %s1408_s15  }
   0xc   : > { %s717_s20 = sadd.s32 4294967294, %s1048_s18   ;;  %s1109_s21 = sadd.s32 1, %s1048_s18  }
   0xd   : > { %s33_s22 = sadd.s32 1, %s1044_s17  ;;  %s30_s23 = ssub.s32 %s1048_s18, %s1109_s21 }
   0xe   : > { %p40_p0 = scmp.ne.s32.totalorder %s1044_s17, %s1040_s16  ;;  %p31_p1 = scmp.eq.s32.totalorder %s30_s23, 0 }
   0xf   : > { %p41_p2 = scmp.eq.s32.totalorder %s1048_s18, 0  ;;  %p46_p3 = scmp.ne.s32.totalorder %s1040_s16, %s1036_s15 }
  0x10   : > { %p47_p4 = scmp.eq.s32.totalorder %s1105_s19, 0  ;;  %p148_p7 = scmp.eq.s32.totalorder %s1105_s19, 1 }
  0x11   : > { %s1121_s24 = scalar_select %p31_p1, %s1044_s17, %s33_s22  }
  0x12   : > { %p42_p5 = por %p41_p2, %p40_p0  ;;  %p1123_p6 = por %p47_p4, %p46_p3 }
  0x13   : > { %1389 = sst [smem:[#allocation16_spill]] %s1121_s24  ;;  %p154_p8 = scmp.eq.s32.totalorder %s717_s20, 1 }
  0x14   : > { %s1390_s25 = scalar_select %p1123_p6, 1, 0 }
  0x15   : > { %p805_p10 = scmp.lt.s32.totalorder %s1048_s18, 2  ;;  %p1130_p11 = por %p148_p7, %p40_p0 }
  0x16   : > { %p1134_p12 = por %p154_p8, %p46_p3  ;;  %s1139_s28 = sand.u32 1, %s1044_s17  }
  0x17   : > { %s1391_s26 = scalar_select %p1130_p11, 1, 0 }
  0x18   : > { %s1392_s27 = scalar_select %p1134_p12, 1, 0 }
  0x19   : > { %s1142_s29 = sshll.u32 %s1048_s18, 6  ;;  %s1145_s30 = sshll.u32 %s1139_s28, 2 }
  0x1a   : > { %p1147_p13 = pnand %p805_p10, %p42_p5  ;;  %s192_s6 = sand.u32 1, %s1048_s18  }
  0x1b   : > { %s1394_s1 = sld [smem:[#allocation17_spill]]  ;;  %s196_s10 = scalar_lea.vmem [#allocation5], %s1145_s30 }
  0x1c   : > { %s1393_s5 = scalar_select %p1147_p13, 1, 0 }
  0x1d   : > { %s203_s11 = sshll.u32 %s196_s10, 4  ;;  %s1162_s12 = scalar_lea.sflag [#allocation6], %s192_s6  ;;  %s1159_s11 = int_to_ptr.vmem [resolvable:$true] %s203_s11 }
  0x1e   : > { %p1168_p2 = pneg %p1147_p13 }
  0x21   : > { %s1156_s9 = scalar_lea.hbm %s1394_s1, %s1142_s29  ;;  %s859_s23 = scalar_lea.hbm %s1394_s1, 128 }
  0x22   : > { %s854_s13 = scalar_lea.hbm %s1156_s9, 64  ;;  %p860_p5 = scmp.lt.u32.totalorder %s1156_s9, %s1394_s1 }
  0x23   : > { %p855_p1 = scmp.ne.s32.totalorder %s1156_s9, %s854_s13  ;;  %p861_p7 = scmp.lt.u32.totalorder %s859_s23, %s854_s13 }
  0x24   : > { %p863_p10 = scmp.lt.u32.totalorder %s854_s13, %s1156_s9 }
  0x25   : > { %p857_p3 = pnand %p1168_p2, %p855_p1  ;;  %p862_p8 = por %p861_p7, %p860_p5 }
  0x27   : > { %p858_p4 = pneg %p857_p3  ;;  %p864_p9 = por %p863_p10, %p862_p8 }
  0x29   : > { %p865_p0 = pnand %p864_p9, %p858_p4 }
  0x2b   : > { %868 = shalt.err (!%p865_p0)
}
  0x2c   : > { %s869_s6 = scalar_lea.vmem %s1159_s11, 64  ;;  %s1050_s10 = smov [#allocation5]  }
  0x2d   : > { %p870_p1 = scmp.ne.s32.totalorder %s1159_s11, %s869_s6  ;;  %s874_s20 = sshll.u32 %s1050_s10, 4  ;;  %s875_s20 = int_to_ptr.vmem [resolvable:$false] %s874_s20 }
  0x2e   : > { %s876_s22 = scalar_lea.vmem %s875_s20, 128  ;;  %p877_p11 = scmp.lt.s32.totalorder %s1159_s11, %s875_s20 }
  0x2f   : > { %p872_p3 = pnand %p870_p1, %p1168_p2  ;;  %p878_p6 = scmp.lt.s32.totalorder %s876_s22, %s869_s6 }
  0x31   : > { %p873_p12 = pneg %p872_p3  ;;  %p879_p5 = por %p878_p6, %p877_p11 }
  0x33   : > { %p880_p7 = pnand %p879_p5, %p873_p12 }
  0x35   : > { %883 = shalt.err (!%p880_p7)
}
  0x36   : > { %794 = dma.hbm_to_vmem [thread:$0]  (!%p1147_p13), %s1156_s9, 64, %s1159_s11, %s1162_s12  }
  0x37   : > { %p243_p9 = scmp.lt.s32.totalorder %s1048_s18, 3  ;;  %s1197_s7 = scalar_lea.hbm %s1377_s0, %s1142_s29 }
  0x38   : > { %p1396_p6 = scmp.ge.s32.totalorder %s1048_s18, 1  ;;  %s178_s6 = scalar_lea.vmem [#allocation2], %s1145_s30 }
  0x39   : > { %s185_s10 = sshll.u32 %s178_s6, 4  ;;  %s175_s20 = scalar_lea.sflag [#allocation3], %s1139_s28  ;;  %s186_s10 = int_to_ptr.vmem [resolvable:$true] %s185_s10 }
  0x3a   : > { %p1201_p11 = pnand %p1396_p6, %p243_p9  ;;  %s884_s9 = scalar_lea.hbm %s1197_s7, 64 }
  0x3b   : > { %p885_p12 = scmp.ne.s32.totalorder %s1197_s7, %s884_s9  ;;  %s889_s13 = scalar_lea.hbm %s1377_s0, 128 }
  0x3c   : > { %s1397_s8 = scalar_select %p1201_p11, 1, 0 }
  0x3d   : > { %p887_p0 = pnand %p885_p12, %p1168_p2  ;;  %p890_p8 = scmp.lt.u32.totalorder %s1197_s7, %s1377_s0 }
  0x3e   : > { %p891_p10 = scmp.lt.u32.totalorder %s889_s13, %s884_s9  ;;  %p893_p3 = scmp.lt.u32.totalorder %s884_s9, %s1197_s7 }
  0x3f   : > { %p888_p4 = pneg %p887_p0 }
  0x40   : > { %p892_p1 = por %p891_p10, %p890_p8 }
  0x42   : > { %p894_p5 = por %p893_p3, %p892_p1 }
  0x44   : > { %p895_p7 = pnand %p894_p5, %p888_p4 }
  0x46   : > { %898 = shalt.err (!%p895_p7)
}
  0x47   : > { %s899_s6 = scalar_lea.vmem %s186_s10, 64  ;;  %s1051_s24 = smov [#allocation2]  }
  0x48   : > { %p900_p9 = scmp.ne.s32.totalorder %s186_s10, %s899_s6  ;;  %s904_s17 = sshll.u32 %s1051_s24, 4  ;;  %s905_s17 = int_to_ptr.vmem [resolvable:$false] %s904_s17 }
  0x49   : > { %s906_s11 = scalar_lea.vmem %s905_s17, 128  ;;  %p907_p0 = scmp.lt.s32.totalorder %s186_s10, %s905_s17 }
  0x4a   : > { %p902_p6 = pnand %p900_p9, %p1168_p2  ;;  %p908_p11 = scmp.lt.s32.totalorder %s906_s11, %s899_s6 }
  0x4c   : > { %p903_p12 = pneg %p902_p6  ;;  %p909_p13 = por %p908_p11, %p907_p0 }
  0x4e   : > { %p910_p8 = pnand %p909_p13, %p903_p12 }
  0x50   : > { %913 = shalt.err (!%p910_p8)
}
  0x51   : > { %p1398_p10 = scmp.ne.s32.totalorder %s1393_s5, 0  ;;  %s1228_s22 = scalar_lea.hbm %s1379_s2, %s1142_s29 }
  0x52   : > { %s214_s17 = scalar_lea.vmem [#allocation7], %s1145_s30  ;;  %s914_s13 = scalar_lea.hbm %s1228_s22, 64 }
  0x53   : > { %791 = dma.hbm_to_vmem [thread:$0]  (!%p1398_p10), %s1197_s7, 64, %s186_s10, %s175_s20  }
  0x54   : > { %s221_s24 = sshll.u32 %s214_s17, 4  ;;  %p915_p13 = scmp.ne.s32.totalorder %s1228_s22, %s914_s13  ;;  %s222_s24 = int_to_ptr.vmem [resolvable:$true] %s221_s24 }
  0x55   : > { %s919_s7 = scalar_lea.hbm %s1379_s2, 128  ;;  %p920_p1 = scmp.lt.u32.totalorder %s1228_s22, %s1379_s2 }
  0x56   : > { %p917_p11 = pnand %p915_p13, %p1168_p2  ;;  %p921_p3 = scmp.lt.u32.totalorder %s919_s7, %s914_s13 }
  0x57   : > { %p923_p7 = scmp.lt.u32.totalorder %s914_s13, %s1228_s22 }
  0x58   : > { %p918_p4 = pneg %p917_p11  ;;  %p922_p5 = por %p921_p3, %p920_p1 }
  0x5a   : > { %p924_p9 = por %p923_p7, %p922_p5 }
  0x5c   : > { %p925_p6 = pnand %p924_p9, %p918_p4 }
  0x5e   : > { %928 = shalt.err (!%p925_p6)
}
  0x5f   : > { %s929_s29 = scalar_lea.vmem %s222_s24, 64  ;;  %s1052_s30 = smov [#allocation7]  }
  0x60   : > { %p930_p12 = scmp.ne.s32.totalorder %s222_s24, %s929_s29  ;;  %s934_s11 = sshll.u32 %s1052_s30, 4  ;;  %s935_s11 = int_to_ptr.vmem [resolvable:$false] %s934_s11 }
  0x61   : > { %s936_s1 = scalar_lea.vmem %s935_s11, 128  ;;  %p937_p13 = scmp.lt.s32.totalorder %s222_s24, %s935_s11 }
  0x62   : > { %p932_p0 = pnand %p930_p12, %p1168_p2  ;;  %p938_p11 = scmp.lt.s32.totalorder %s936_s1, %s929_s29 }
  0x64   : > { %p933_p8 = pneg %p932_p0  ;;  %p939_p10 = por %p938_p11, %p937_p13 }
  0x66   : > { %p940_p1 = pnand %p939_p10, %p933_p8 }
  0x68   : > { %943 = shalt.err (!%p940_p1)
}
  0x69   : > { %p1399_p3 = scmp.ne.s32.totalorder %s1393_s5, 0  ;;  %s726_s9 = sshll.u32 %s1048_s18, 4 }
  0x6a   : > { %s1253_s23 = scalar_lea.hbm %s1380_s3, %s726_s9  ;;  %s231_s6 = scalar_lea.vmem [#allocation8], %s1139_s28 }
  0x6b   : > { %797 = dma.hbm_to_vmem [thread:$0]  (!%p1399_p3), %s1228_s22, 64, %s222_s24, %s1162_s12  }
  0x6c   : > { %s238_s7 = sshll.u32 %s231_s6, 4  ;;  %s229_s10 = scalar_lea.sflag [#allocation9], %s1139_s28  ;;  %s239_s7 = int_to_ptr.vmem [resolvable:$true] %s238_s7 }
  0x6d   : > { %s944_s20 = scalar_lea.hbm %s1253_s23, 16  ;;  %s949_s24 = scalar_lea.hbm %s1380_s3, 32 }
  0x6e   : > { %p945_p10 = scmp.ne.s32.totalorder %s1253_s23, %s944_s20  ;;  %p950_p7 = scmp.lt.u32.totalorder %s1253_s23, %s1380_s3 }
  0x6f   : > { %p951_p9 = scmp.lt.u32.totalorder %s949_s24, %s944_s20  ;;  %p953_p12 = scmp.lt.u32.totalorder %s944_s20, %s1253_s23 }
  0x70   : > { %p947_p4 = pnand %p945_p10, %p1168_p2 }
  0x71   : > { %p952_p6 = por %p951_p9, %p950_p7 }
  0x72   : > { %p948_p5 = pneg %p947_p4 }
  0x73   : > { %p954_p0 = por %p953_p12, %p952_p6 }
  0x75   : > { %p955_p8 = pnand %p954_p0, %p948_p5 }
  0x77   : > { %958 = shalt.err (!%p955_p8)
}
  0x78   : > { %s959_s28 = scalar_lea.vmem %s239_s7, 16  ;;  %s1053_s11 = smov [#allocation8]  }
  0x79   : > { %p960_p13 = scmp.ne.s32.totalorder %s239_s7, %s959_s28  ;;  %s964_s1 = sshll.u32 %s1053_s11, 4  ;;  %s965_s1 = int_to_ptr.vmem [resolvable:$false] %s964_s1 }
  0x7a   : > { %s966_s9 = scalar_lea.vmem %s965_s1, 32  ;;  %p967_p10 = scmp.lt.s32.totalorder %s239_s7, %s965_s1 }
  0x7b   : > { %p962_p11 = pnand %p960_p13, %p1168_p2  ;;  %p968_p4 = scmp.lt.s32.totalorder %s966_s9, %s959_s28 }
  0x7d   : > { %p963_p1 = pneg %p962_p11  ;;  %p969_p3 = por %p968_p4, %p967_p10 }
  0x7f   : > { %p970_p7 = pnand %p969_p3, %p963_p1 }
  0x81   : > { %973 = shalt.err (!%p970_p7)
}
  0x82   : > { %p1400_p9 = scmp.ne.s32.totalorder %s1393_s5, 0  ;;  %p1401_p5 = scmp.ne.s32.totalorder %s1397_s8, 0 }
  0x83   : > { %s1277_s14 = sand.u32 (!%p1401_p5), 1, %s1040_s16   ;;  %p1402_p2 = scmp.ne.s32.totalorder (!%p1401_p5), %s1390_s25, 0 }
  0x84   : > { %800 = dma.hbm_to_vmem [thread:$0]  (!%p1400_p9), %s1253_s23, 16, %s239_s7, %s229_s10  }
  0x85   : > { %247 = sbr.rel (%p1401_p5) target bundleno = 1258 (0x4ea), region = 36  ;;  %s1280_s17 = sshll.u32 (!%p1401_p5), %s1277_s14, 2 }
  0x86   : > { %s250_s13 = scalar_lea.sflag (!%p1401_p5), [#allocation3], %s1277_s14  ;;  %s253_s6 = scalar_lea.vmem (!%p1401_p5), [#allocation2], %s1280_s17 }
  0x8c   : > { %1019 = dma.done.wait (%p1402_p2), %s250_s13, 64  }
  0x8d   : > { %1021 = vsyncadd (%p1402_p2), %s250_s13, 4294967232  ;;  %s258_s5 = sand.u32 1, %s1105_s19   ;;  %s262_s23 = scalar_lea.vmem [#allocation5], %s1280_s17 }
  0x8e   : > { %s259_s8 = scalar_lea.sflag [#allocation6], %s258_s5 }
  0x8f   : > { %1023 = dma.done.wait (%p1402_p2), %s259_s8, 128  }
  0x90   : > { %1025 = vsyncadd (%p1402_p2), %s259_s8, 4294967168  ;;  %s271_s7 = scalar_lea.vmem [#allocation7], %s1280_s17  ;;  %s277_s10 = scalar_lea.sflag [#allocation9], %s1277_s14 }
  0x91   : > { %s279_s20 = scalar_lea.vmem [#allocation8], %s1277_s14 }
  0x92   : > { %1027 = dma.done.wait (%p1402_p2), %s277_s10, 16  }
  0x93   : > { %1029 = vsyncadd (%p1402_p2), %s277_s10, 4294967280  ;;  %v1054_v0 = vmov 0.0   ;;  %vm1055_vm0 = vmmov 0   ;;  %vm329_vm1 = vcmask 130048   ;;  %v321_v1 = vld [vmem:[%s262_s23] sm:$0xf] }
  0x94   : > { %754 = vmatprep.subr.bf16.mxu0 %v1054_v0  ;;  %756 = vmatprep.mubr.msk.bf16.mxu0 %vm1055_vm0, %v1054_v0  ;;  %v334_v2 = vsel %vm329_vm1, %v321_v1, 0  ;;  %v320_v3 = vld [vmem:[%s253_s6] sm:$0xf]  ;;  %s1056_s25 = smov 112   ;;  %vm376_vm2 = vcmask 64512   ;;  %vm390_vm3 = vcmask 1043456  }
  0x95   : > { %760 = vmatprep.subr.bf16.mxu1 %v1054_v0  ;;  %762 = vmatprep.mubr.msk.bf16.mxu1 %vm1055_vm0, %v1054_v0  ;;  %v844_v4 = vld [vmem:[%s253_s6] ss:$0 sps:$4 sm:$0xff]   ;;  %v843_v12 = vld [vmem:[%s262_s23] ss:$0 sps:$4 sm:$0xff]   ;;  %v322_v13 = vld [vmem:[%s271_s7] sm:$0xf] }
  0x96   : > { %755 = vmatpush3.bf16.xpose.msra.mxu0 %v334_v2  ;;  %445 = vrot.lane.b32.xlu1 %v844_v4, %s1056_s25  ;;  %v732_v5 = vld [vmem:[%s279_s20] ss:$0 sm:$0xff]  ;;  %v392_v14 = vsel %vm390_vm3, %v322_v13, 0  ;;  %v845_v23 = vld [vmem:[%s271_s7] ss:$0 sps:$4 sm:$0xff]   ;;  %vm437_vm4 = vcmask 125952  }
  0x97   : > { %772 = vmatprep.subr.bf16.mxu0 %v1054_v0  ;;  %761 = vmatpush3.bf16.msra.mxu1 %v392_v14  ;;  %s317_s12 = scalar_lea.vmem [#allocation10], %s1280_s17  ;;  %s1057_s22 = smov 16   ;;  %vm568_vm5 = vcmask 257152  }
  0x98   : > { %766 = vmatprep.subr.bf16.mxu1 %v1054_v0  ;;  %s742_s24 = sshll.u32 %s1105_s19, 6  ;;  %s584_s29 = sshll.u32 %s317_s12, 4  ;;  %s1335_s29 = int_to_ptr.vmem [resolvable:$true] %s584_s29 }
  0x99   : > { %s1333_s11 = scalar_lea.hbm %s1381_s4, %s742_s24  ;;  %s571_s1 = scalar_lea.sflag [#allocation4], %s1277_s14 }
  0x9a   : > { %s974_s9 = scalar_lea.vmem %s1335_s29, 64  ;;  %p1403_p6 = scmp.ne.s32.totalorder %s1391_s26, 0 }
  0x9b   : > { %p975_p3 = scmp.ne.s32.totalorder %s1335_s29, %s974_s9  ;;  %s1058_s19 = smov [#allocation10]  }
  0x9c   : > { %s978_s17 = sshll.u32 %s1058_s19, 4  ;;  %s979_s17 = int_to_ptr.vmem [resolvable:$false] %s978_s17 }
  0x9d   : > { %757 = vmatmul.mubr.msk.bf16.vlgmr.msra.gmra.mrb[0].mxu0 %vm329_vm1, %v320_v3  ;;  %p976_p12 = pnand %p975_p3, %p1403_p6  ;;  %s980_s13 = scalar_lea.vmem %s979_s17, 128 }
  0x9e   : > { %774 = vmatprep.mubr.msk.bf16.mxu0 %vm1055_vm0, %v1054_v0  ;;  %p981_p8 = scmp.lt.s32.totalorder %s1335_s29, %s979_s17  ;;  %p982_p13 = scmp.lt.s32.totalorder %s980_s13, %s974_s9 }
  0x9f   : > { %p977_p0 = pneg %p976_p12 }
  0xa0   : > { %p983_p11 = por %p982_p13, %p981_p8 }
  0xa2   : > { %p984_p1 = pnand %p983_p11, %p977_p0 }
 0x108   : > { %v446_v22 = vpop.permute.xlu1 %445 }
 0x170   : > { %v370_v6 = vpop.f32.mrb[0].mxu0 }
 0x171   : > { %v371_v7 = vadd.f32 %v732_v5, %v370_v6  ;;  %v758_v8 = vpop.f32.mrb[1].mxu0 }
 0x172   : > { %v373_v9 = vpop.f32.mrb[2].mxu0 }
 0x173   : > { %v759_v10 = vpop.f32.mrb[3].mxu0  ;;  %v377_v11 = vsel %vm376_vm2, %v371_v7, -inf }
 0x174   : > { %378 = vmax.xlane.f32.xlu0 %v377_v11 }
 0x18a   : > { %450 = vrot.lane.b32.xlu0 %v843_v12, %s1056_s25 }
 0x18e   : > { %511 = vrot.lane.b32.xlu0 %v845_v23, %s1056_s25 }
 0x201   : > { %v379_v15 = vpop.xlane.xlu0 %378 }
 0x202   : > { %v380_v16 = vsub.f32 %v371_v7, %v379_v15 }
 0x204   : > { %v381_v17 = vmul.f32 1.442695, %v380_v16 }
 0x205   : > { %v451_v18 = vpop.permute.xlu0 %450 }
 0x206   : > { %846 = vpow2.f32 %v381_v17  ;;  %v456_v20 = vsel %vm329_vm1, %v451_v18, 0 }
 0x209   : > { %v512_v35 = vpop.permute.xlu0 %511 }
 0x20a   : > { %v517_v36 = vsel %vm390_vm3, %v512_v35, 0 }
 0x20b   : > { %773 = vmatpush3.bf16.msra.mxu0 %v517_v36 }
 0x210   : > { %v847_v19 = vpop.eup %846 }
 0x211   : > { %v386_v21 = vpack.c.bf16 %v847_v19, %v847_v19  ;;  %v383_v34 = vsel %vm376_vm2, %v847_v19, 0.0 }
 0x213   : > { %763 = vmatmul.mubr.msk.bf16.vlgmr.msra.gmra.mrb[0].mxu1 %vm376_vm2, %v386_v21 }
 0x214   : > { %767 = vmatpush3.bf16.xpose.msra.mxu1 %v456_v20  ;;  %768 = vmatprep.mubr.msk.bf16.mxu1 %vm1055_vm0, %v1054_v0 }
 0x21b   : > { %769 = vmatmul.mubr.msk.bf16.vlgmr.msra.gmra.mrb[4].mxu1 %vm329_vm1, %v446_v22 }
 0x2e6   : > { %v428_v24 = vpop.f32.mrb[0].mxu1 }
 0x2e7   : > { %v764_v25 = vpop.f32.mrb[1].mxu1 }
 0x2e8   : > { %v431_v26 = vpop.f32.mrb[2].mxu1 }
 0x2e9   : > { %v765_v27 = vpop.f32.mrb[3].mxu1 }
 0x2ee   : > { %v492_v28 = vpop.f32.mrb[4].mxu1 }
 0x2ef   : > { %v493_v29 = vadd.f32 %v732_v5, %v492_v28  ;;  %v770_v30 = vpop.f32.mrb[5].mxu1 }
 0x2f0   : > { %v495_v31 = vpop.f32.mrb[6].mxu1 }
 0x2f1   : > { %v771_v32 = vpop.f32.mrb[7].mxu1  ;;  %v498_v33 = vsel %vm376_vm2, %v493_v29, -inf }
 0x2f2   : > { %499 = vmax.xlane.f32.xlu1 %v498_v33 }
 0x2f6   : > { %384 = vadd.xlane.f32.xlu1 %v383_v34 }
 0x37f   : > { %v500_v37 = vpop.xlane.xlu1 %499 }
 0x380   : > { %v501_v38 = vsub.f32 %v493_v29, %v500_v37 }
 0x382   : > { %v502_v39 = vmul.f32 1.442695, %v501_v38 }
 0x383   : > { %v385_v40 = vpop.xlane.xlu1 %384 }
 0x384   : > { %848 = vpow2.f32 %v502_v39 }
 0x385   : > { %850 = vrcp.f32 %v385_v40 }
 0x38e   : > { %v849_v41 = vpop.eup %848 }
 0x38f   : > { %v851_v42 = vpop.eup %850  ;;  %v504_v43 = vsel %vm376_vm2, %v849_v41, 0.0  ;;  %v507_v44 = vpack.c.bf16 %v849_v41, %v849_v41 }
 0x390   : > { %v435_v45 = vmul.f32 %v851_v42, %v428_v24  ;;  %505 = vadd.xlane.f32.xlu0 %v504_v43 }
 0x391   : > { %775 = vmatmul.mubr.msk.bf16.vlgmr.msra.gmra.mrb[4].mxu0 %vm376_vm2, %v507_v44 }
 0x392   : > { %v436_v46 = vpack.c.bf16 %v435_v45, %v435_v45 }
 0x394   : > { %438 = vst.msk [vmem:[%s317_s12] sm:$0xf] %vm437_vm4, %v436_v46 }
 0x41d   : > { %v506_v47 = vpop.xlane.xlu0 %505 }
 0x41e   : > { %852 = vrcp.f32 %v506_v47 }
 0x428   : > { %v853_v48 = vpop.eup %852 }
 0x464   : > { %v553_v49 = vpop.f32.mrb[4].mxu0 }
 0x465   : > { %v560_v50 = vmul.f32 %v853_v48, %v553_v49  ;;  %v776_v51 = vpop.f32.mrb[5].mxu0 }
 0x466   : > { %v556_v52 = vpop.f32.mrb[6].mxu0 }
 0x467   : > { %v745_v53 = vpack.c.bf16 %v560_v50, %v560_v50  ;;  %v777_v54 = vpop.f32.mrb[7].mxu0 }
 0x469   : > { %565 = vrot.lane.b32.xlu1 %v745_v53, %s1057_s22 }
 0x4db   : > { %v566_v55 = vpop.permute.xlu1 %565 }
 0x4dc   : > { %569 = vst.msk [vmem:[%s317_s12] sm:$0xf] %vm568_vm5, %v566_v55 }
 0x4dd   : > { %987 = shalt.err (!%p984_p1)
}
 0x4de   : > { %s988_s14 = scalar_lea.hbm %s1333_s11, 64  ;;  %s992_s8 = scalar_lea.hbm %s1381_s4, 128 }
 0x4df   : > { %p989_p10 = scmp.ne.s32.totalorder %s1333_s11, %s988_s14  ;;  %p993_p9 = scmp.lt.u32.totalorder %s1333_s11, %s1381_s4 }
 0x4e0   : > { %p994_p5 = scmp.lt.u32.totalorder %s992_s8, %s988_s14  ;;  %p996_p3 = scmp.lt.u32.totalorder %s988_s14, %s1333_s11 }
 0x4e1   : > { %p990_p4 = pnand %p989_p10, %p1403_p6 }
 0x4e2   : > { %p995_p2 = por %p994_p5, %p993_p9 }
 0x4e3   : > { %p991_p7 = pneg %p990_p4 }
 0x4e4   : > { %p997_p12 = por %p996_p3, %p995_p2 }
 0x4e6   : > { %p998_p0 = pnand %p997_p12, %p991_p7 }
 0x4e8   : > { %1001 = shalt.err (!%p998_p0)
}
 0x4e9   : > { %786 = dma.vmem_to_hbm [thread:$0]  (%p1403_p6), %s1335_s29, 64, %s1333_s11, %s571_s1  }
 0x4ea PF: > { %s596_s10 = sand.u32 1, %s1036_s15   ;;  %p1404_p8 = scmp.ne.s32.totalorder %s1392_s27, 0 }
 0x4eb   : > { %p1405_p13 = scmp.ge.s32.totalorder %s1048_s18, 2  ;;  %s597_s20 = scalar_lea.sflag [#allocation4], %s596_s10 }
 0x4ed   : > { %p802_p11 = pnand %p1405_p13, %p1404_p8 }
 0x4ef   : > { %1031 = dma.done.wait (!%p802_p11), %s597_s20, 64  }
 0x4f0   : > { %1033 = vsyncadd (!%p802_p11), %s597_s20, 4294967232  ;;  %s1406_s25 = sld [smem:[#allocation15_spill]]  ;;  %s1407_s17 = sld [smem:[#allocation16_spill]] }
 0x4f1   : > { %p23_p1 = scmp.ge.s32.totalorder %s1109_s21, 4   ;;  %s1408_s15 = smov %s1040_s16 }
 0x4f2   : > { %s1410_s18 = smov %s1109_s21 }
 0x4f3   :  { %25 = sbr.rel (!%p23_p1) target bundleno = 11 (0xb), region = 118 }
 0x4f6   : > { %s1409_s16 = smov %s1406_s25 }
 0x4fa   :  { %602 = vsyncpa [#allocation3], 1 }
 0x4fb   :  { %604 = vsyncpa [#allocation3 + $0x1], 1 }
 0x4fc   :  { %605 = vsyncpa [#allocation6], 1 }
 0x4fd   :  { %607 = vsyncpa [#allocation6 + $0x1], 1 }
 0x4fe   :  { %608 = vsyncpa [#allocation9], 1 }
 0x4ff   :  { %610 = vsyncpa [#allocation9 + $0x1], 1 }
 0x500   :  { %611 = vsyncpa [#allocation4], 1 }
 0x501   :  { %613 = vsyncpa [#allocation4 + $0x1], 1 }

// kernel: nomic_embedding_forward.14
= control target key start
LH: loop header
LB: loop body
LE: loop exit
PB: predicated region body
PF: predicated region fallthrough
CT: control target
= control target key end

     0   :  { %13 = vsyncpa [#allocation4], 0  ;;  %s872_s0 = inlined_call_operand.hbm [shape: f32[16,32], index: 0, kind: input, shape index: {}, may-alias: {0,5}]   ;;  %s873_s1 = inlined_call_operand.hbm [shape: bf16[32,64], index: 1, kind: input, shape index: {}]   ;;  %s874_s2 = inlined_call_operand.hbm [shape: f32[1,64], index: 2, kind: input, shape index: {}]   ;;  %s875_s3 = inlined_call_operand.hbm [shape: bf16[64,32], index: 3, kind: input, shape index: {}]   ;;  %s876_s4 = inlined_call_operand.hbm [shape: f32[1,32], index: 4, kind: input, shape index: {}]   ;;  %s877_s5 = inlined_call_operand.hbm [shape: f32[16,32], index: 5, kind: input, shape index: {}, may-alias: {0,5}]   ;;  %s878_s6 = inlined_call_operand.hbm [shape: f32[1,32], index: 6, kind: input, shape index: {}]   ;;  %s879_s7 = inlined_call_operand.hbm [shape: f32[1,32], index: 7, kind: input, shape index: {}]   ;;  %s880_s8 = inlined_call_operand.hbm [shape: f32[16,32], index: 8, kind: output, shape index: {}]  }
   0x1   :  { %14 = vsyncpa [#allocation7], 0 }
   0x2   :  { %15 = vsyncpa [#allocation10], 0 }
   0x3   :  { %16 = vsyncpa [#allocation13], 0 }
   0x4   :  { %17 = vsyncpa [#allocation16], 0 }
   0x5   :  { %18 = vsyncpa [#allocation5], 0  ;;  %s677_s27 = smov [#allocation6]   ;;  %s467_s9 = scalar_lea.hbm %s873_s1, 256 }
   0x6   :  { %s36_s28 = sshll.u32 %s677_s27, 4  ;;  %p468_p0 = scmp.ne.s32.totalorder %s873_s1, %s467_s9  ;;  %s37_s28 = int_to_ptr.vmem [resolvable:$true] %s36_s28 }
   0x7   :  { %p471_p1 = scmp.lt.u32.totalorder %s467_s9, %s873_s1 }
   0x9   :  { %p473_p2 = pnand %p471_p1, %p468_p0 }
   0xb   :  { %476 = shalt.err (!%p473_p2)
}
   0xc   :  { %s477_s14 = scalar_lea.vmem %s37_s28, 256  ;;  %p482_p4 = scmp.lt.s32.totalorder %s37_s28, %s37_s28 }
   0xd   :  { %p478_p3 = scmp.ne.s32.totalorder %s37_s28, %s477_s14  ;;  %p483_p5 = scmp.lt.s32.totalorder %s477_s14, %s477_s14 }
   0xf   :  { %p484_p6 = por %p483_p5, %p482_p4 }
  0x11   :  { %p485_p7 = pnand %p484_p6, %p478_p3 }
  0x13   :  { %488 = shalt.err (!%p485_p7)
}
  0x14   :  { %s678_s15 = smov 64   ;;  %s679_s16 = smov 4  }
  0x15   :  { %42 = dma.hbm_to_vmem [thread:$0]  %s873_s1, 256, %s37_s28, [#allocation7], %s678_s15, %s678_s15, %s679_s16  }
  0x16   :  { %s680_s19 = smov [#allocation9]   ;;  %s489_s23 = scalar_lea.hbm %s875_s3, 512 }
  0x17   :  { %s58_s20 = sshll.u32 %s680_s19, 4  ;;  %p490_p8 = scmp.ne.s32.totalorder %s875_s3, %s489_s23  ;;  %s59_s20 = int_to_ptr.vmem [resolvable:$true] %s58_s20 }
  0x18   :  { %p493_p9 = scmp.lt.u32.totalorder %s489_s23, %s875_s3 }
  0x1a   :  { %p495_p10 = pnand %p493_p9, %p490_p8 }
  0x1c   :  { %498 = shalt.err (!%p495_p10)
}
  0x1d   :  { %s499_s29 = scalar_lea.vmem %s59_s20, 512  ;;  %p504_p12 = scmp.lt.s32.totalorder %s59_s20, %s59_s20 }
  0x1e   :  { %p500_p11 = scmp.ne.s32.totalorder %s59_s20, %s499_s29  ;;  %p505_p13 = scmp.lt.s32.totalorder %s499_s29, %s499_s29 }
  0x20   :  { %p506_p0 = por %p505_p13, %p504_p12 }
  0x22   :  { %p507_p1 = pnand %p506_p0, %p500_p11 }
  0x24   :  { %510 = shalt.err (!%p507_p1)
}
  0x25   :  { %64 = dma.hbm_to_vmem [thread:$0]  %s875_s3, 512, %s59_s20, [#allocation10], %s678_s15, %s678_s15, %s679_s16  }
  0x26   :  { %s681_s30 = smov [#allocation12]   ;;  %s682_s10 = smov [#allocation3]  }
  0x27   :  { %s80_s9 = sshll.u32 %s681_s30, 4  ;;  %s24_s11 = sshll.u32 %s682_s10, 4  ;;  %s81_s9 = int_to_ptr.vmem [resolvable:$true] %s80_s9  ;;  %s761_s11 = int_to_ptr.vmem [resolvable:$true] %s24_s11 }
  0x28   :  { %s511_s14 = scalar_lea.hbm %s877_s5, 256 }
  0x29   :  { %p512_p2 = scmp.ne.s32.totalorder %s877_s5, %s511_s14  ;;  %p515_p3 = scmp.lt.u32.totalorder %s511_s14, %s877_s5 }
  0x2b   :  { %p517_p4 = pnand %p515_p3, %p512_p2 }
  0x2d   :  { %520 = shalt.err (!%p517_p4)
}
  0x2e   :  { %s521_s3 = scalar_lea.vmem %s81_s9, 256  ;;  %p526_p6 = scmp.lt.s32.totalorder %s81_s9, %s81_s9 }
  0x2f   :  { %p522_p5 = scmp.ne.s32.totalorder %s81_s9, %s521_s3  ;;  %p527_p7 = scmp.lt.s32.totalorder %s521_s3, %s521_s3 }
  0x31   :  { %p528_p8 = por %p527_p7, %p526_p6 }
  0x33   :  { %p529_p9 = pnand %p528_p8, %p522_p5 }
  0x35   :  { %532 = shalt.err (!%p529_p9)
}
  0x36   :  { %s683_s15 = smov 128   ;;  %s684_s16 = smov 8  }
  0x37   :  { %86 = dma.hbm_to_vmem [thread:$0]  %s877_s5, 256, %s81_s9, [#allocation13], %s683_s15, %s683_s15, %s684_s16  }
  0x38   :  { %s533_s25 = scalar_lea.hbm %s872_s0, 256 }
  0x39   :  { %p534_p10 = scmp.ne.s32.totalorder %s872_s0, %s533_s25  ;;  %p537_p11 = scmp.lt.u32.totalorder %s533_s25, %s872_s0 }
  0x3b   :  { %p539_p12 = pnand %p537_p11, %p534_p10 }
  0x3d   :  { %542 = shalt.err (!%p539_p12)
}
  0x3e   :  { %s543_s28 = scalar_lea.vmem %s761_s11, 256  ;;  %p548_p0 = scmp.lt.s32.totalorder %s761_s11, %s761_s11 }
  0x3f   :  { %p544_p13 = scmp.ne.s32.totalorder %s761_s11, %s543_s28  ;;  %p549_p1 = scmp.lt.s32.totalorder %s543_s28, %s543_s28 }
  0x41   :  { %p550_p2 = por %p549_p1, %p548_p0 }
  0x43   :  { %p551_p3 = pnand %p550_p2, %p544_p13 }
  0x45   :  { %554 = shalt.err (!%p551_p3)
}
  0x46   :  { %30 = dma.hbm_to_vmem [thread:$0]  %s872_s0, 256, %s761_s11, [#allocation4], %s683_s15, %s683_s15, %s684_s16  }
  0x47   :  { %s685_s9 = smov [#allocation8]   ;;  %s686_s12 = smov [#allocation11]  }
  0x48   :  { %s49_s10 = sshll.u32 %s685_s9, 4  ;;  %s71_s13 = sshll.u32 %s686_s12, 4  ;;  %s50_s10 = int_to_ptr.vmem [resolvable:$true] %s49_s10  ;;  %s72_s13 = int_to_ptr.vmem [resolvable:$true] %s71_s13 }
  0x49   :  { %s555_s18 = scalar_lea.hbm %s874_s2, 16 }
  0x4a   :  { %p556_p4 = scmp.ne.s32.totalorder %s874_s2, %s555_s18  ;;  %p559_p5 = scmp.lt.u32.totalorder %s555_s18, %s874_s2 }
  0x4c   :  { %p561_p6 = pnand %p559_p5, %p556_p4 }
  0x4e   :  { %564 = shalt.err (!%p561_p6)
}
  0x4f   :  { %s565_s0 = scalar_lea.vmem %s50_s10, 16  ;;  %s569_s11 = scalar_lea.vmem %s50_s10, 32 }
  0x50   :  { %p566_p7 = scmp.ne.s32.totalorder %s50_s10, %s565_s0  ;;  %p570_p8 = scmp.lt.s32.totalorder %s50_s10, %s50_s10 }
  0x51   :  { %p571_p9 = scmp.lt.s32.totalorder %s569_s11, %s565_s0 }
  0x53   :  { %p572_p10 = por %p571_p9, %p570_p8 }
  0x55   :  { %p573_p11 = pnand %p572_p10, %p566_p7 }
  0x57   :  { %576 = shalt.err (!%p573_p11)
}
  0x58   :  { %52 = dma.hbm_to_vmem [thread:$0]  %s874_s2, 16, %s50_s10, [#allocation7]  }
  0x59   :  { %s577_s26 = scalar_lea.hbm %s876_s4, 16 }
  0x5a   :  { %p578_p12 = scmp.ne.s32.totalorder %s876_s4, %s577_s26  ;;  %p581_p13 = scmp.lt.u32.totalorder %s577_s26, %s876_s4 }
  0x5c   :  { %p583_p0 = pnand %p581_p13, %p578_p12 }
  0x5e   :  { %586 = shalt.err (!%p583_p0)
}
  0x5f   :  { %s587_s5 = scalar_lea.vmem %s72_s13, 16  ;;  %s591_s30 = scalar_lea.vmem %s72_s13, 32 }
  0x60   :  { %p588_p1 = scmp.ne.s32.totalorder %s72_s13, %s587_s5  ;;  %p592_p2 = scmp.lt.s32.totalorder %s72_s13, %s72_s13 }
  0x61   :  { %p593_p3 = scmp.lt.s32.totalorder %s591_s30, %s587_s5 }
  0x63   :  { %p594_p4 = por %p593_p3, %p592_p2 }
  0x65   :  { %p595_p5 = pnand %p594_p4, %p588_p1 }
  0x67   :  { %598 = shalt.err (!%p595_p5)
}
  0x68   :  { %74 = dma.hbm_to_vmem [thread:$0]  %s876_s4, 16, %s72_s13, [#allocation10]  }
  0x69   :  { %s687_s10 = smov [#allocation14]   ;;  %s688_s14 = smov [#allocation15]  }
  0x6a   :  { %s93_s12 = sshll.u32 %s687_s10, 4  ;;  %s103_s17 = sshll.u32 %s688_s14, 4  ;;  %s94_s12 = int_to_ptr.vmem [resolvable:$true] %s93_s12  ;;  %s104_s17 = int_to_ptr.vmem [resolvable:$true] %s103_s17 }
  0x6b   :  { %s599_s21 = scalar_lea.hbm %s878_s6, 16 }
  0x6c   :  { %p600_p6 = scmp.ne.s32.totalorder %s878_s6, %s599_s21  ;;  %p603_p7 = scmp.lt.u32.totalorder %s599_s21, %s878_s6 }
  0x6e   :  { %p605_p8 = pnand %p603_p7, %p600_p6 }
  0x70   :  { %608 = shalt.err (!%p605_p8)
}
  0x71   :  { %s609_s4 = scalar_lea.vmem %s94_s12, 16  ;;  %s613_s13 = scalar_lea.vmem %s94_s12, 32 }
  0x72   :  { %p610_p9 = scmp.ne.s32.totalorder %s94_s12, %s609_s4  ;;  %p614_p10 = scmp.lt.s32.totalorder %s94_s12, %s94_s12 }
  0x73   :  { %p615_p11 = scmp.lt.s32.totalorder %s613_s13, %s609_s4 }
  0x75   :  { %p616_p12 = por %p615_p11, %p614_p10 }
  0x77   :  { %p617_p13 = pnand %p616_p12, %p610_p9 }
  0x79   :  { %620 = shalt.err (!%p617_p13)
}
  0x7a   :  { %96 = dma.hbm_to_vmem [thread:$0]  %s878_s6, 16, %s94_s12, [#allocation13]  }
  0x7b   :  { %s621_s26 = scalar_lea.hbm %s879_s7, 16 }
  0x7c   :  { %p622_p0 = scmp.ne.s32.totalorder %s879_s7, %s621_s26  ;;  %p625_p1 = scmp.lt.u32.totalorder %s621_s26, %s879_s7 }
  0x7e   :  { %p627_p2 = pnand %p625_p1, %p622_p0 }
  0x80   :  { %630 = shalt.err (!%p627_p2)
}
  0x81   :  { %s631_s5 = scalar_lea.vmem %s104_s17, 16  ;;  %s635_s30 = scalar_lea.vmem %s104_s17, 32 }
  0x82   :  { %p632_p3 = scmp.ne.s32.totalorder %s104_s17, %s631_s5  ;;  %p636_p4 = scmp.lt.s32.totalorder %s104_s17, %s104_s17 }
  0x83   :  { %p637_p5 = scmp.lt.s32.totalorder %s635_s30, %s631_s5 }
  0x85   :  { %p638_p6 = por %p637_p5, %p636_p4 }
  0x87   :  { %p639_p7 = pnand %p638_p6, %p632_p3 }
  0x89   :  { %642 = shalt.err (!%p639_p7)
}
  0x8a   :  { %106 = dma.hbm_to_vmem [thread:$0]  %s879_s7, 16, %s104_s17, [#allocation16]  }
  0x8b   :  { %665 = dma.done.wait [#allocation4], 256  }
  0x8c   :  { %666 = vsyncadd [#allocation4], 4294967040 }
  0x8d   :  { %667 = dma.done.wait [#allocation7], 272  }
  0x8e   :  { %668 = vsyncadd [#allocation7], 4294967024 }
  0x8f   :  { %669 = dma.done.wait [#allocation10], 528  }
  0x90   :  { %670 = vsyncadd [#allocation10], 4294966768 }
  0x91   :  { %671 = dma.done.wait [#allocation13], 272  }
  0x92   :  { %672 = vsyncadd [#allocation13], 4294967024 }
  0x93   :  { %673 = dma.done.wait [#allocation16], 16  }
  0x94   :  { %674 = vsyncadd [#allocation16], 4294967280  ;;  %vm136_vm0 = vcmask 261120   ;;  %v689_v0 = vmov 0.0   ;;  %vm690_vm1 = vmmov 0   ;;  %v453_v1 = vld [vmem:[#allocation6] sm:$0xff]  }
  0x95   :  { %418 = vmatprep.subr.bf16.mxu0 %v689_v0  ;;  %422 = vmatprep.mubr.msk.bf16.mxu0 %vm690_vm1, %v689_v0  ;;  %137 = vst.msk [vmem:[#allocation2] sm:$0xff] %vm136_vm0, %v689_v0  ;;  %138 = vst.msk [vmem:[#allocation2 + $0x8] sm:$0xff] %vm136_vm0, %v689_v0  ;;  %v454_v2 = vld [vmem:[#allocation6 + $0x8] sm:$0xff]   ;;  %v139_v3 = vld [vmem:[#allocation3] sm:$0xff]  ;;  %vm263_vm2 = vcmask 523264   ;;  %s691_s7 = smov [#allocation17]  }
  0x96   :  { %426 = vmatprep.subr.bf16.mxu1 %v689_v0  ;;  %434 = vmatprep.mubr.msk.bf16.mxu1 %vm690_vm1, %v689_v0  ;;  %v140_v4 = vld [vmem:[#allocation3 + $0x8] sm:$0xff]  ;;  %v457_v8 = vld [vmem:[#allocation9 + $0x10] sm:$0xff]   ;;  %v458_v9 = vld [vmem:[#allocation9 + $0x18] sm:$0xff]   ;;  %s382_s9 = sshll.u32 %s691_s7, 4  ;;  %s383_s9 = int_to_ptr.vmem [resolvable:$true] %s382_s9 }
  0x97   :  { %419 = vmatpush3.bf16.msra.mxu0 %v453_v1  ;;  %v141_v5 = vpack.c.bf16 %v140_v4, %v139_v3  ;;  %v455_v6 = vld [vmem:[#allocation9] sm:$0xff]   ;;  %v456_v7 = vld [vmem:[#allocation9 + $0x8] sm:$0xff]   ;;  %v398_v10 = vld [vmem:[#allocation8] ss:$0 sm:$0xff]  ;;  %s643_s10 = scalar_lea.vmem %s383_s9, 256  ;;  %p648_p9 = scmp.lt.s32.totalorder %s383_s9, %s383_s9 }
  0x98   :  { %420 = vmatprep.subr.bf16.mxu0 %v689_v0  ;;  %427 = vmatpush3.bf16.msra.mxu1 %v455_v6  ;;  %v407_v44 = vld [vmem:[#allocation11] ss:$0 sm:$0xff]  ;;  %v326_v46 = vld [vmem:[#allocation12] sm:$0xff]  ;;  %v327_v49 = vld [vmem:[#allocation12 + $0x8] sm:$0xff]  ;;  %p644_p8 = scmp.ne.s32.totalorder %s383_s9, %s643_s10  ;;  %p649_p10 = scmp.lt.s32.totalorder %s643_s10, %s643_s10 }
  0x99   :  { %428 = vmatprep.subr.bf16.mxu1 %v689_v0 }
  0x9a   :  { %p650_p11 = por %p649_p10, %p648_p9 }
  0x9b   :  { %421 = vmatpush3.bf16.msra.mxu0 %v454_v2 }
  0x9c   :  { %429 = vmatpush3.bf16.msra.mxu1 %v456_v7  ;;  %v228_v36 = vld [vmem:[#allocation2] sm:$0xff]  ;;  %v229_v38 = vld [vmem:[#allocation2 + $0x8] sm:$0xff]  ;;  %p651_p12 = pnand %p650_p11, %p644_p8 }
  0x9d   :  { %430 = vmatprep.subr.bf16.mxu1 %v689_v0 }
  0x9e   :  { %423 = vmatmul.mubr.msk.bf16.vlgmr.msra.gmra.mrb[0].mxu0 %vm136_vm0, %v141_v5 }
  0xa0   :  { %431 = vmatpush3.bf16.msra.mxu1 %v457_v8  ;;  %v408_v8 = vld [vmem:[#allocation14] ss:$0 sm:$0xff] }
  0xa1   :  { %432 = vmatprep.subr.bf16.mxu1 %v689_v0 }
  0xa4   :  { %433 = vmatpush3.bf16.msra.mxu1 %v458_v9 }
 0x171   :  { %v203_v11 = vpop.f32.mrb[0].mxu0 }
 0x172   :  { %v204_v12 = vadd.f32 %v398_v10, %v203_v11  ;;  %v424_v13 = vpop.f32.mrb[1].mxu0 }
 0x173   :  { %v206_v14 = vpop.f32.mrb[2].mxu0 }
 0x174   :  { %v210_v15 = vmul.f32 %v204_v12, %v204_v12  ;;  %v207_v16 = vadd.f32 %v398_v10, %v206_v14  ;;  %v425_v17 = vpop.f32.mrb[3].mxu0  ;;  %v409_v10 = vld [vmem:[#allocation15] ss:$0 sm:$0xff] }
 0x176   :  { %v212_v18 = vmul.f32 %v210_v15, %v204_v12  ;;  %v211_v19 = vmul.f32 %v207_v16, %v207_v16 }
 0x178   :  { %v214_v20 = vmul.f32 0.044715, %v212_v18  ;;  %v213_v21 = vmul.f32 %v211_v19, %v207_v16 }
 0x17a   :  { %v216_v22 = vadd.f32 %v214_v20, %v204_v12  ;;  %v215_v23 = vmul.f32 0.044715, %v213_v21 }
 0x17c   :  { %v218_v24 = vmul.f32 0.7978846, %v216_v22  ;;  %v217_v25 = vadd.f32 %v215_v23, %v207_v16 }
 0x17e   :  { %459 = vtanh.f32 %v218_v24  ;;  %v219_v26 = vmul.f32 0.7978846, %v217_v25 }
 0x180   :  { %461 = vtanh.f32 %v219_v26 }
 0x188   :  { %v460_v27 = vpop.eup %459 }
 0x189   :  { %v222_v28 = vadd.f32 1.0, %v460_v27 }
 0x18a   :  { %v462_v29 = vpop.eup %461 }
 0x18b   :  { %v224_v30 = vmul.f32 0.5, %v222_v28  ;;  %v223_v31 = vadd.f32 1.0, %v462_v29 }
 0x18d   :  { %v225_v32 = vmul.f32 0.5, %v223_v31  ;;  %v226_v33 = vmul.f32 %v224_v30, %v204_v12 }
 0x18f   :  { %v227_v34 = vmul.f32 %v225_v32, %v207_v16 }
 0x191   :  { %v230_v35 = vpack.c.bf16 %v227_v34, %v226_v33 }
 0x193   :  { %435 = vmatmul.mubr.msk.bf16.vlgmr.msra.gmra.mrb[0].mxu1 %vm263_vm2, %v230_v35 }
 0x266   :  { %v301_v37 = vpop.f32.mrb[0].mxu1 }
 0x267   :  { %v308_v39 = vadd.f32 %v301_v37, %v228_v36  ;;  %v436_v40 = vpop.f32.mrb[1].mxu1 }
 0x268   :  { %v304_v41 = vpop.f32.mrb[2].mxu1 }
 0x269   :  { %310 = vst.msk [vmem:[#allocation2] sm:$0xff] %vm136_vm0, %v308_v39  ;;  %v309_v42 = vadd.f32 %v304_v41, %v229_v38  ;;  %v437_v43 = vpop.f32.mrb[3].mxu1 }
 0x26b   :  { %311 = vst.msk [vmem:[#allocation2 + $0x8] sm:$0xff] %vm136_vm0, %v309_v42 }
 0x270   :  { %v315_v45 = vld [vmem:[#allocation2] sm:$0xff] }
 0x271   :  { %v324_v47 = vadd.f32 %v407_v44, %v315_v45 }
 0x272   :  { %v316_v48 = vld [vmem:[#allocation2 + $0x8] sm:$0xff] }
 0x273   :  { %v328_v50 = vadd.f32 %v326_v46, %v324_v47  ;;  %v325_v51 = vadd.f32 %v407_v44, %v316_v48 }
 0x275   :  { %v330_v52 = vsel %vm136_vm0, %v328_v50, 0.0  ;;  %v329_v53 = vadd.f32 %v327_v49, %v325_v51 }
 0x276   :  { %331 = vadd.xlane.f32.xlu0 %v330_v52 }
 0x277   :  { %v333_v54 = vsel %vm136_vm0, %v329_v53, 0.0 }
 0x27a   :  { %334 = vadd.xlane.f32.xlu0 %v333_v54 }
 0x303   :  { %v332_v55 = vpop.xlane.xlu0 %331 }
 0x304   :  { %v337_v56 = vmul.f32 0.03125, %v332_v55 }
 0x306   :  { %v339_v57 = vsub.f32 %v328_v50, %v337_v56 }
 0x307   :  { %v335_v58 = vpop.xlane.xlu0 %334 }
 0x308   :  { %v338_v59 = vmul.f32 0.03125, %v335_v58  ;;  %v341_v60 = vmul.f32 %v339_v57, %v339_v57 }
 0x30a   :  { %v340_v61 = vsub.f32 %v329_v53, %v338_v59  ;;  %v343_v62 = vsel %vm136_vm0, %v341_v60, 0.0 }
 0x30b   :  { %344 = vadd.xlane.f32.xlu1 %v343_v62 }
 0x30c   :  { %v342_v63 = vmul.f32 %v340_v61, %v340_v61 }
 0x30e   :  { %v346_v0 = vsel %vm136_vm0, %v342_v63, 0.0 }
 0x30f   :  { %347 = vadd.xlane.f32.xlu1 %v346_v0 }
 0x398   :  { %v345_v1 = vpop.xlane.xlu1 %344 }
 0x399   :  { %v349_v2 = vmul.f32 0.03125, %v345_v1 }
 0x39b   :  { %v351_v3 = vadd.f32 1e-12, %v349_v2 }
 0x39c   :  { %v348_v4 = vpop.xlane.xlu1 %347 }
 0x39d   :  { %463 = vrsqrt.f32 %v351_v3  ;;  %v350_v5 = vmul.f32 0.03125, %v348_v4 }
 0x39f   :  { %v352_v6 = vadd.f32 1e-12, %v350_v5 }
 0x3a1   :  { %465 = vrsqrt.f32 %v352_v6 }
 0x3a7   :  { %v464_v7 = vpop.eup %463 }
 0x3a8   :  { %v355_v9 = vmul.f32 %v464_v7, %v339_v57 }
 0x3aa   :  { %v364_v11 = vmul.f32 %v408_v8, %v355_v9 }
 0x3ab   :  { %v466_v12 = vpop.eup %465 }
 0x3ac   :  { %v356_v13 = vmul.f32 %v466_v12, %v340_v61  ;;  %v373_v14 = vadd.f32 %v409_v10, %v364_v11 }
 0x3ae   :  { %v365_v15 = vmul.f32 %v408_v8, %v356_v13  ;;  %375 = vst.msk [vmem:[#allocation17] sm:$0xff] %vm136_vm0, %v373_v14 }
 0x3b0   :  { %v374_v16 = vadd.f32 %v409_v10, %v365_v15 }
 0x3b2   :  { %376 = vst.msk [vmem:[#allocation17 + $0x8] sm:$0xff] %vm136_vm0, %v374_v16 }
 0x3b3   :  { %654 = shalt.err (!%p651_p12)
}
 0x3b4   :  { %s655_s17 = scalar_lea.hbm %s880_s8, 256 }
 0x3b5   :  { %p656_p13 = scmp.ne.s32.totalorder %s880_s8, %s655_s17  ;;  %p659_p0 = scmp.lt.u32.totalorder %s655_s17, %s880_s8 }
 0x3b7   :  { %p661_p1 = pnand %p659_p0, %p656_p13 }
 0x3b9   :  { %664 = shalt.err (!%p661_p1)
}
 0x3ba   :  { %388 = dma.vmem_to_hbm [thread:$0]  %s383_s9, 256, %s880_s8, [#allocation5], %s683_s15, %s683_s15, %s684_s16  }
 0x3bb   :  { %675 = dma.done.wait [#allocation5], 256  }
 0x3bc   :  { %676 = vsyncadd [#allocation5], 4294967040 }
 0x3bd   :  { %392 = vsyncpa [#allocation4], 1 }
 0x3be   :  { %393 = vsyncpa [#allocation7], 1 }
 0x3bf   :  { %394 = vsyncpa [#allocation10], 1 }
 0x3c0   :  { %395 = vsyncpa [#allocation13], 1 }
 0x3c1   :  { %396 = vsyncpa [#allocation16], 1 }
 0x3c2   :  { %397 = vsyncpa [#allocation5], 1 }

// kernel: nomic_embedding_forward.19
= control target key start
LH: loop header
LB: loop body
LE: loop exit
PB: predicated region body
PF: predicated region fallthrough
CT: control target
= control target key end

     0   :  { %7 = vsyncpa [#allocation3], 0  ;;  %s790_s0 = inlined_call_operand.hbm [shape: f32[2,8,32], index: 0, kind: input, shape index: {}]   ;;  %s791_s1 = inlined_call_operand.hbm [shape: f32[2,8,1], index: 1, kind: input, shape index: {}]   ;;  %s792_s2 = inlined_call_operand.hbm [shape: f32[2,1,32], index: 2, kind: output, shape index: {}]  }
   0x1   :  { %9 = vsyncpa [#allocation3 + $0x1], 0 }
   0x2   :  { %10 = vsyncpa [#allocation6], 0 }
   0x3   :  { %12 = vsyncpa [#allocation6 + $0x1], 0 }
   0x4   :  { %13 = vsyncpa [#allocation4], 0 }
   0x5   :  { %15 = vsyncpa [#allocation4 + $0x1], 0  ;;  %s578_s9 = smov 0   ;;  %s580_s10 = smov 0  }
   0x6   :  { %s582_s11 = smov 0   ;;  %s584_s12 = smov 0  }
   0x7 LB: > { %s599_s13 = sadd.s32 4294967295, %s555_s12   ;;  %s347_s14 = sadd.s32 4294967294, %s555_s12   ;;  %s555_s12 = sphi %s584_s12, %s811_s12   ;;  %s551_s11 = sphi %s582_s11, %s810_s11   ;;  %s547_s10 = sphi %s580_s10, %s809_s10   ;;  %s543_s9 = sphi %s578_s9, %s808_s9  }
   0x8   : > { %s603_s15 = sadd.s32 1, %s555_s12   ;;  %s28_s16 = sadd.s32 1, %s551_s11 }
   0x9   : > { %s25_s17 = ssub.s32 %s555_s12, %s603_s15  ;;  %p35_p0 = scmp.ne.s32.totalorder %s551_s11, %s547_s10 }
   0xa   : > { %p26_p1 = scmp.eq.s32.totalorder %s25_s17, 0  ;;  %p36_p2 = scmp.eq.s32.totalorder %s555_s12, 0 }
   0xb   : > { %p41_p3 = scmp.ne.s32.totalorder %s547_s10, %s543_s9  ;;  %p42_p4 = scmp.eq.s32.totalorder %s599_s13, 0 }
   0xc   : > { %s615_s18 = scalar_select %p26_p1, %s551_s11, %s28_s16  }
   0xd   : > { %p617_p5 = por %p36_p2, %p35_p0  ;;  %p621_p6 = por %p42_p4, %p41_p3 }
   0xe   : > { %p91_p7 = scmp.eq.s32.totalorder %s599_s13, 1  ;;  %p97_p8 = scmp.eq.s32.totalorder %s347_s14, 1 }
   0xf   : > { %s796_s20 = scalar_select %p621_p6, 1, 0 }
  0x10   : > { %p383_p10 = scmp.lt.s32.totalorder %s555_s12, 2  ;;  %p628_p11 = por %p91_p7, %p35_p0 }
  0x11   : > { %p632_p12 = por %p97_p8, %p41_p3  ;;  %s637_s23 = sand.u32 1, %s551_s11  }
  0x12   : > { %s797_s21 = scalar_select %p628_p11, 1, 0 }
  0x13   : > { %s798_s22 = scalar_select %p632_p12, 1, 0 }
  0x14   : > { %s351_s24 = sshll.u32 %s555_s12, 7  ;;  %s350_s25 = sshll.u32 %s637_s23, 3 }
  0x15   : > { %s646_s28 = scalar_lea.hbm %s790_s0, %s351_s24  ;;  %s121_s29 = scalar_lea.vmem [#allocation2], %s350_s25 }
  0x16   : > { %s128_s30 = sshll.u32 %s121_s29, 4  ;;  %p652_p13 = pnand %p383_p10, %p617_p5  ;;  %s656_s30 = int_to_ptr.vmem [resolvable:$true] %s128_s30 }
  0x17   : > { %s118_s4 = scalar_lea.sflag [#allocation3], %s637_s23  ;;  %s425_s5 = scalar_lea.hbm %s646_s28, 128 }
  0x18   : > { %p426_p2 = scmp.ne.s32.totalorder %s646_s28, %s425_s5  ;;  %p427_p3 = pneg %p652_p13 }
  0x19   : > { %s430_s8 = scalar_lea.hbm %s790_s0, 256  ;;  %p431_p5 = scmp.lt.u32.totalorder %s646_s28, %s790_s0 }
  0x1a   : > { %p428_p4 = pnand %p427_p3, %p426_p2  ;;  %p432_p8 = scmp.lt.u32.totalorder %s430_s8, %s425_s5 }
  0x1b   : > { %p434_p9 = scmp.lt.u32.totalorder %s425_s5, %s646_s28 }
  0x1c   : > { %p429_p7 = pneg %p428_p4  ;;  %p433_p10 = por %p432_p8, %p431_p5 }
  0x1e   : > { %p435_p0 = por %p434_p9, %p433_p10 }
  0x20   : > { %p436_p1 = pnand %p435_p0, %p429_p7 }
  0x22   : > { %439 = shalt.err (!%p436_p1)
}
  0x23   : > { %s440_s17 = scalar_lea.vmem %s656_s30, 128  ;;  %s557_s19 = smov [#allocation2]  }
  0x24   : > { %p441_p2 = scmp.ne.s32.totalorder %s656_s30, %s440_s17  ;;  %s445_s26 = sshll.u32 %s557_s19, 4  ;;  %s446_s26 = int_to_ptr.vmem [resolvable:$false] %s445_s26 }
  0x25   : > { %s447_s27 = scalar_lea.vmem %s446_s26, 256  ;;  %p448_p11 = scmp.lt.s32.totalorder %s656_s30, %s446_s26 }
  0x26   : > { %p443_p4 = pnand %p441_p2, %p427_p3  ;;  %p449_p5 = scmp.lt.s32.totalorder %s447_s27, %s440_s17 }
  0x28   : > { %p444_p12 = pneg %p443_p4  ;;  %p450_p8 = por %p449_p5, %p448_p11 }
  0x2a   : > { %p451_p9 = pnand %p450_p8, %p444_p12 }
  0x2c   : > { %454 = shalt.err (!%p451_p9)
}
  0x2d   : > { %375 = dma.hbm_to_vmem [thread:$0]  (!%p652_p13), %s646_s28, 128, %s656_s30, %s118_s4  }
  0x2e   : > { %p800_p0 = scmp.lt.s32.totalorder %s555_s12, 3  ;;  %p801_p1 = scmp.ge.s32.totalorder %s555_s12, 1 }
  0x2f   : > { %s699_s7 = scalar_lea.hbm %s791_s1, %s351_s24  ;;  %s139_s8 = scalar_lea.vmem [#allocation5], %s350_s25 }
  0x30   : > { %p690_p7 = pnand %p801_p1, %p800_p0  ;;  %s146_s14 = sshll.u32 %s139_s8, 4  ;;  %s147_s14 = int_to_ptr.vmem [resolvable:$true] %s146_s14 }
  0x31   : > { %s136_s28 = scalar_lea.sflag [#allocation6], %s637_s23  ;;  %s455_s30 = scalar_lea.hbm %s699_s7, 128 }
  0x32   : > { %s802_s29 = scalar_select %p690_p7, 1, 0 }
  0x33   : > { %p456_p11 = scmp.ne.s32.totalorder %s699_s7, %s455_s30  ;;  %s460_s24 = scalar_lea.hbm %s791_s1, 256 }
  0x34   : > { %p461_p2 = scmp.lt.u32.totalorder %s699_s7, %s791_s1  ;;  %p462_p4 = scmp.lt.u32.totalorder %s460_s24, %s455_s30 }
  0x35   : > { %p458_p12 = pnand %p456_p11, %p427_p3  ;;  %p464_p8 = scmp.lt.u32.totalorder %s455_s30, %s699_s7 }
  0x36   : > { %p463_p5 = por %p462_p4, %p461_p2 }
  0x37   : > { %p459_p10 = pneg %p458_p12 }
  0x38   : > { %p465_p9 = por %p464_p8, %p463_p5 }
  0x3a   : > { %p466_p0 = pnand %p465_p9, %p459_p10 }
  0x3c   : > { %469 = shalt.err (!%p466_p0)
}
  0x3d   : > { %s470_s23 = scalar_lea.vmem %s147_s14, 128  ;;  %s558_s25 = smov [#allocation5]  }
  0x3e   : > { %p471_p1 = scmp.ne.s32.totalorder %s147_s14, %s470_s23  ;;  %s475_s26 = sshll.u32 %s558_s25, 4  ;;  %s476_s26 = int_to_ptr.vmem [resolvable:$false] %s475_s26 }
  0x3f   : > { %s477_s27 = scalar_lea.vmem %s476_s26, 256  ;;  %p478_p6 = scmp.lt.s32.totalorder %s147_s14, %s476_s26 }
  0x40   : > { %p473_p11 = pnand %p471_p1, %p427_p3  ;;  %p479_p7 = scmp.lt.s32.totalorder %s477_s27, %s470_s23 }
  0x42   : > { %p474_p12 = pneg %p473_p11  ;;  %p480_p2 = por %p479_p7, %p478_p6 }
  0x44   : > { %p481_p4 = pnand %p480_p2, %p474_p12 }
  0x46   : > { %484 = shalt.err (!%p481_p4)
}
  0x47   : > { %378 = dma.hbm_to_vmem [thread:$0]  (!%p652_p13), %s699_s7, 128, %s147_s14, %s136_s28  }
  0x48   : > { %p803_p10 = scmp.ne.s32.totalorder %s802_s29, 0 }
  0x49   : > { %s726_s5 = sand.u32 (!%p803_p10), 1, %s547_s10   ;;  %p804_p3 = scmp.ne.s32.totalorder (!%p803_p10), %s796_s20, 0 }
  0x4a   : > { %155 = sbr.rel (%p803_p10) target bundleno = 592 (0x250), region = 28  ;;  %s355_s6 = sshll.u32 (!%p803_p10), %s726_s5, 3 }
  0x4b   : > { %s158_s8 = scalar_lea.sflag (!%p803_p10), [#allocation3], %s726_s5  ;;  %s161_s30 = scalar_lea.vmem (!%p803_p10), [#allocation2], %s355_s6 }
  0x51   : > { %530 = dma.done.wait (%p804_p3), %s158_s8, 128  }
  0x52   : > { %532 = vsyncadd (%p804_p3), %s158_s8, 4294967168  ;;  %s167_s3 = scalar_lea.sflag [#allocation6], %s726_s5  ;;  %s170_s7 = scalar_lea.vmem [#allocation5], %s355_s6 }
  0x53   : > { %534 = dma.done.wait (%p804_p3), %s167_s3, 128  }
  0x54   : > { %536 = vsyncadd (%p804_p3), %s167_s3, 4294967168  ;;  %v559_v0 = vmov 0   ;;  %vm211_vm0 = vcmask 7168   ;;  %v196_v1 = vld [vmem:[%s170_s7] sm:$0xff]  ;;  %v195_v11 = vld [vmem:[%s161_s30] sm:$0xff]  ;;  %vm203_vm1 = vcmask 261120  }
  0x55   : > { %420 = vset.pattern.permute.xlu0 %v559_v0  ;;  %v212_v2 = vsel %vm211_vm0, %v196_v1, 0.0  ;;  %s560_s29 = smov 1.0   ;;  %vm227_vm2 = vcmask 253952   ;;  %s561_s4 = smov 1e-24  }
  0x56   : > { %213 = vadd.xlane.f32.xlu0 %v212_v2  ;;  %s357_s24 = sshll.u32 %s599_s13, 4  ;;  %s194_s17 = scalar_lea.vmem [#allocation7], %s726_s5 }
  0x57   : > { %s258_s19 = sshll.u32 %s194_s17, 4  ;;  %s745_s27 = scalar_lea.hbm %s792_s2, %s357_s24  ;;  %s747_s19 = int_to_ptr.vmem [resolvable:$true] %s258_s19 }
  0x58   : > { %s246_s6 = scalar_lea.sflag [#allocation4], %s726_s5  ;;  %s485_s8 = scalar_lea.vmem %s747_s19, 16 }
  0x59   : > { %p486_p6 = scmp.ne.s32.totalorder %s747_s19, %s485_s8  ;;  %p805_p13 = scmp.ne.s32.totalorder %s797_s21, 0 }
  0x5a   : > { %s562_s13 = smov [#allocation7]  }
  0x5b   : > { %p487_p7 = pnand %p486_p6, %p805_p13  ;;  %s489_s30 = sshll.u32 %s562_s13, 4  ;;  %s490_s30 = int_to_ptr.vmem [resolvable:$false] %s489_s30 }
  0x5c   : > { %s491_s3 = scalar_lea.vmem %s490_s30, 32  ;;  %p492_p8 = scmp.lt.s32.totalorder %s747_s19, %s490_s30 }
  0x5d   : > { %p488_p5 = pneg %p487_p7  ;;  %p493_p9 = scmp.lt.s32.totalorder %s491_s3, %s485_s8 }
  0x5f   : > { %p494_p0 = por %p493_p9, %p492_p8 }
  0x61   : > { %p495_p1 = pnand %p494_p0, %p488_p5 }
  0x6c   : > { %199 = vperm.xlu0 %420, %v196_v1  }
  0xe3   : > { %v214_v3 = vpop.xlane.xlu0 %213 }
  0xe4   : > { %v215_v4 = vrot.slane %v214_v3, 4 }
  0xe6   : > { %v216_v5 = vadd.f32 %v215_v4, %v214_v3 }
  0xe8   : > { %v217_v6 = vrot.slane %v216_v5, 2 }
  0xea   : > { %v218_v7 = vadd.f32 %v217_v6, %v216_v5 }
  0xeb   : > { %v200_v10 = vpop.permute.xlu0 %199 }
  0xec   : > { %v219_v8 = vrot.slane %v218_v7, 1  ;;  %v202_v12 = vmul.f32 %v200_v10, %v195_v11 }
  0xee   : > { %v220_v9 = vadd.f32 %v219_v8, %v218_v7  ;;  %v204_v13 = vsel %vm203_vm1, %v202_v12, 0.0 }
  0xef   : > { %v205_v14 = vrot.slane %v204_v13, 4 }
  0xf0   : > { %360 = vpush %v220_v9 }
  0xf1   : > { %v206_v15 = vadd.f32 %v205_v14, %v204_v13 }
  0xf3   : > { %v207_v16 = vrot.slane %v206_v15, 2 }
  0xf5   : > { %v208_v18 = vadd.f32 %v207_v16, %v206_v15 }
  0xf7   : > { %v209_v19 = vrot.slane %v208_v18, 1 }
  0xf9   : > { %v210_v20 = vadd.f32 %v209_v19, %v208_v18 }
 0x121   : > { %s361_s20 = spop %360 }
 0x122   : > { %s222_s14 = smax.f32 %s560_s29, %s361_s20 }
 0x123   : > { %v223_v17 = vstv %s222_s14 }
 0x124   : > { %421 = vrcp.f32 %v223_v17 }
 0x12e   : > { %v422_v21 = vpop.eup %421 }
 0x12f   : > { %v225_v22 = vmul.f32 %v422_v21, %v210_v20 }
 0x131   : > { %v226_v23 = vmul.f32 %v225_v22, %v225_v22 }
 0x133   : > { %v228_v24 = vsel %vm227_vm2, %v226_v23, 0.0 }
 0x134   : > { %229 = vadd.xlane.f32.xlu1 %v228_v24 }
 0x1c1   : > { %v230_v25 = vpop.xlane.xlu1 %229 }
 0x1c2   : > { %v231_v26 = vrot.slane %v230_v25, 4 }
 0x1c4   : > { %v232_v27 = vadd.f32 %v231_v26, %v230_v25 }
 0x1c6   : > { %v233_v28 = vrot.slane %v232_v27, 2 }
 0x1c8   : > { %v234_v29 = vadd.f32 %v233_v28, %v232_v27 }
 0x1ca   : > { %v235_v30 = vrot.slane %v234_v29, 1 }
 0x1cc   : > { %v236_v31 = vadd.f32 %v235_v30, %v234_v29 }
 0x1ce   : > { %362 = vpush %v236_v31 }
 0x1ff   : > { %s363_s28 = spop %362 }
 0x200   : > { %s238_s16 = smax.f32 %s561_s4, %s363_s28 }
 0x201   : > { %v239_v32 = vstv %s238_s16 }
 0x202   : > { %423 = vrsqrt.f32 %v239_v32 }
 0x20c   : > { %v424_v33 = vpop.eup %423 }
 0x20d   : > { %364 = vpush %v424_v33 }
 0x23e   : > { %s365_s23 = spop %364 }
 0x23f   : > { %v242_v34 = vstv %s365_s23 }
 0x240   : > { %v243_v35 = vmul.f32 %v242_v34, %v225_v22 }
 0x242   : > { %244 = vst.msk [vmem:[%s194_s17] sm:$0x1] %vm227_vm2, %v243_v35 }
 0x243   : > { %498 = shalt.err (!%p495_p1)
}
 0x244   : > { %s499_s5 = scalar_lea.hbm %s745_s27, 16  ;;  %s503_s29 = scalar_lea.hbm %s792_s2, 32 }
 0x245   : > { %p500_p11 = scmp.ne.s32.totalorder %s745_s27, %s499_s5  ;;  %p504_p4 = scmp.lt.u32.totalorder %s745_s27, %s792_s2 }
 0x246   : > { %p505_p10 = scmp.lt.u32.totalorder %s503_s29, %s499_s5  ;;  %p507_p6 = scmp.lt.u32.totalorder %s499_s5, %s745_s27 }
 0x247   : > { %p501_p12 = pnand %p500_p11, %p805_p13 }
 0x248   : > { %p506_p3 = por %p505_p10, %p504_p4 }
 0x249   : > { %p502_p2 = pneg %p501_p12 }
 0x24a   : > { %p508_p7 = por %p507_p6, %p506_p3 }
 0x24c   : > { %p509_p5 = pnand %p508_p7, %p502_p2 }
 0x24e   : > { %512 = shalt.err (!%p509_p5)
}
 0x24f   : > { %370 = dma.vmem_to_hbm [thread:$0]  (%p805_p13), %s747_s19, 16, %s745_s27, %s246_s6  }
 0x250 PF: > { %s270_s4 = sand.u32 1, %s543_s9   ;;  %p806_p8 = scmp.ne.s32.totalorder %s798_s22, 0 }
 0x251   : > { %p807_p9 = scmp.ge.s32.totalorder %s555_s12, 2  ;;  %s271_s16 = scalar_lea.sflag [#allocation4], %s270_s4 }
 0x253   : > { %p380_p0 = pnand %p807_p9, %p806_p8 }
 0x255   : > { %538 = dma.done.wait (!%p380_p0), %s271_s16, 16  }
 0x256   : > { %540 = vsyncadd (!%p380_p0), %s271_s16, 4294967280  ;;  %p18_p1 = scmp.ge.s32.totalorder %s603_s15, 4   ;;  %s808_s9 = smov %s547_s10 }
 0x257   : > { %s809_s10 = smov %s551_s11  ;;  %s810_s11 = smov %s615_s18 }
 0x258   : > { %s811_s12 = smov %s603_s15  ;;  %20 = sbr.rel (!%p18_p1) target bundleno = 7 (0x7), region = 86 }
 0x25f   :  { %275 = vsyncpa [#allocation3], 1 }
 0x260   :  { %277 = vsyncpa [#allocation3 + $0x1], 1 }
 0x261   :  { %278 = vsyncpa [#allocation6], 1 }
 0x262   :  { %280 = vsyncpa [#allocation6 + $0x1], 1 }
 0x263   :  { %281 = vsyncpa [#allocation4], 1 }
 0x264   :  { %283 = vsyncpa [#allocation4 + $0x1], 1 }

</bundles_post_ra>
